<compile_context>
chip_gen: v6e
topology: v6e:2x2x1
jax: 0.10.0
libtpu: 0.0.40
codegen_flags: <defaults>
</compile_context>

<pallas_src>
import functools
import math

import jax
import jax.numpy as jnp
from jax.experimental import pallas as pl
from jax.experimental.pallas import tpu as pltpu


# ----------------------------------------------------------------------------
# Kernel 1: fused RM encoder stack.
# Grid = (group_blocks, layers); each grid step processes Gb independent
# (b, t) groups of S = N+1 tokens for one layer.  The activation tile lives in
# the output block (constant block index along the layer axis => VMEM
# resident); attention is batched block-diagonal (Gb, S, S).
# ----------------------------------------------------------------------------
_RM_PARAM_ORDER = ("wqkv", "bqkv", "wo", "bo", "ln1_g", "ln1_b",
                   "w1", "b1", "w2", "b2", "ln2_g", "ln2_b")


def _encoder_stack_kernel(x_ref, wqkv_ref, bqkv_ref, wo_ref, bo_ref,
                          g1_ref, be1_ref, w1_ref, b1_ref, w2_ref, b2_ref,
                          g2_ref, be2_ref, o_ref, *, scale):
    layer = pl.program_id(1)

    @pl.when(layer == 0)
    def _():
        o_ref[...] = x_ref[...].astype(jnp.float32)

    x3 = o_ref[...]                                   # (Gb, S, D) f32 resident
    gb, s, d = x3.shape
    x = x3.reshape(gb * s, d)                         # (Gb*S, D)

    # Fused QKV projection (bf16 operands, f32 accumulation).
    xb = x.astype(jnp.bfloat16)
    qkv = jnp.dot(xb, wqkv_ref[0], preferred_element_type=jnp.float32) + bqkv_ref[0]
    q = (qkv[:, :d] * scale).astype(jnp.bfloat16).reshape(gb, s, d)
    k = qkv[:, d:2 * d].astype(jnp.bfloat16).reshape(gb, s, d)
    v = qkv[:, 2 * d:].astype(jnp.bfloat16).reshape(gb, s, d)

    # Batched block-diagonal attention: each group only sees its own S tokens.
    sc = jnp.einsum('gqd,gkd->gqk', q, k, preferred_element_type=jnp.float32)
    sc = sc - jnp.max(sc, axis=-1, keepdims=True)
    p = jnp.exp(sc)
    p = p * pl.reciprocal(jnp.sum(p, axis=-1, keepdims=True), approx=True)
    a = jnp.einsum('gqk,gkd->gqd', p.astype(jnp.bfloat16), v,
                   preferred_element_type=jnp.float32)
    a = a.reshape(gb * s, d)
    a = jnp.dot(a.astype(jnp.bfloat16), wo_ref[0],
                preferred_element_type=jnp.float32) + bo_ref[0]

    # Residual + post-LN 1 (f32)
    x = x + a
    mu = jnp.mean(x, axis=-1, keepdims=True)
    var = jnp.mean((x - mu) ** 2, axis=-1, keepdims=True)
    x = (x - mu) * jax.lax.rsqrt(var + 1e-5) * g1_ref[0] + be1_ref[0]

    # FFN (bf16 operands, f32 accumulation)
    h = jnp.maximum(
        jnp.dot(x.astype(jnp.bfloat16), w1_ref[0],
                preferred_element_type=jnp.float32) + b1_ref[0], 0.0)
    f = jnp.dot(h.astype(jnp.bfloat16), w2_ref[0],
                preferred_element_type=jnp.float32) + b2_ref[0]

    # Residual + post-LN 2 (f32)
    x = x + f
    mu = jnp.mean(x, axis=-1, keepdims=True)
    var = jnp.mean((x - mu) ** 2, axis=-1, keepdims=True)
    x = (x - mu) * jax.lax.rsqrt(var + 1e-5) * g2_ref[0] + be2_ref[0]

    o_ref[...] = x.reshape(gb, s, d)


def _largest_divisor(n, cap):
    if n <= cap:
        return n
    for c in range(cap, 0, -1):
        if n % c == 0:
            return c
    return n


def rm_encoder_stack(x_grp, rm):
    # x_grp: (G, S, D) with G = B*T independent attention groups of length S.
    G, S, D = x_grp.shape
    L = rm["wqkv"].shape[0]
    g_block = _largest_divisor(G, 128)
    num_gb = G // g_block
    scale = 1.0 / math.sqrt(float(D))

    def w_spec(arr):
        return pl.BlockSpec((1,) + arr.shape[1:], lambda g, l: (l, 0, 0))

    in_specs = ([pl.BlockSpec((g_block, S, D), lambda g, l: (g, 0, 0))] +
                [w_spec(rm[k]) for k in _RM_PARAM_ORDER])

    return pl.pallas_call(
        functools.partial(_encoder_stack_kernel, scale=scale),
        out_shape=jax.ShapeDtypeStruct((G, S, D), jnp.float32),
        grid_spec=pltpu.PrefetchScalarGridSpec(
            num_scalar_prefetch=0,
            grid=(num_gb, L),                 # layer axis innermost (resident acc)
            in_specs=in_specs,
            out_specs=pl.BlockSpec((g_block, S, D), lambda g, l: (g, 0, 0)),
        ),
        compiler_params=pltpu.CompilerParams(
            dimension_semantics=("parallel", "arbitrary"),
            vmem_limit_bytes=32 * 1024 * 1024,
        ),
    )(x_grp, *[rm[k] for k in _RM_PARAM_ORDER])


# ----------------------------------------------------------------------------
# Kernel 2: fused 2-layer MLP (Linear -> ReLU -> Linear), M-tiled grid
# ----------------------------------------------------------------------------
def _mlp_kernel(x_ref, w1_ref, b1_ref, w2_ref, b2_ref, o_ref):
    x = x_ref[...].astype(jnp.bfloat16)
    h = jnp.maximum(
        jnp.dot(x, w1_ref[...], preferred_element_type=jnp.float32)
        + b1_ref[...], 0.0)
    o = jnp.dot(h.astype(jnp.bfloat16), w2_ref[...],
                preferred_element_type=jnp.float32) + b2_ref[...]
    o_ref[...] = o.astype(o_ref.dtype)


def _mlp_row_tile():
    # v5e/v6e (128 MiB VMEM) afford 1024-row tiles; v7x (64 MiB) stays at 512.
    try:
        info = pltpu.get_tpu_info()
        if getattr(info, "vmem_capacity_bytes", 0) >= 100 * 1024 * 1024:
            return 1024
    except Exception:
        pass
    return 512


def mlp_pallas(x, w1, b1, w2, b2):
    M, Din = x.shape
    Dh = w1.shape[1]
    Dout = w2.shape[1]
    row_tile = _mlp_row_tile()
    tm = M if M <= row_tile else row_tile
    vmem_limit = (96 if tm >= 1024 else 32) * 1024 * 1024
    return pl.pallas_call(
        _mlp_kernel,
        out_shape=jax.ShapeDtypeStruct((M, Dout), x.dtype),
        grid_spec=pltpu.PrefetchScalarGridSpec(
            num_scalar_prefetch=0,
            grid=(pl.cdiv(M, tm),),
            in_specs=[
                pl.BlockSpec((tm, Din), lambda i: (i, 0)),
                pl.BlockSpec((Din, Dh), lambda i: (0, 0)),
                pl.BlockSpec((1, Dh), lambda i: (0, 0)),
                pl.BlockSpec((Dh, Dout), lambda i: (0, 0)),
                pl.BlockSpec((1, Dout), lambda i: (0, 0)),
            ],
            out_specs=pl.BlockSpec((tm, Dout), lambda i: (i, 0)),
        ),
        compiler_params=pltpu.CompilerParams(
            dimension_semantics=("parallel",),
            vmem_limit_bytes=vmem_limit,
        ),
    )(x, w1, b1, w2, b2)


# ----------------------------------------------------------------------------
# Kernel 3: interaction-pair MLP with fused pair construction.
# MLP(concat(pf[i], pf[j])) == relu(pf[i]@W1_top + pf[j]@W1_bot + b1) @ W2 + b2;
# the whole batch runs in a single grid step: one broadcast over (B, N, N, H)
# and one (B*N*N, H) @ (H, D) matmul.  The (B, N*N, 2D) pair tensor never
# exists; the diagonal is removed by a tiny static gather in the wrapper.
# ----------------------------------------------------------------------------
def _inter_pair_kernel(pf_ref, w1a_ref, w1b_ref, b1_ref, w2_ref, b2_ref, o_ref):
    bsz, n, d = pf_ref.shape
    hdim = w1a_ref.shape[1]
    pf = pf_ref[...].reshape(bsz * n, d).astype(jnp.bfloat16)
    a = jnp.dot(pf, w1a_ref[...], preferred_element_type=jnp.float32)      # (B*N, H)
    b = jnp.dot(pf, w1b_ref[...], preferred_element_type=jnp.float32) + b1_ref[...]
    a = a.reshape(bsz, n, 1, hdim)
    b = b.reshape(bsz, 1, n, hdim)
    h = jnp.maximum(a + b, 0.0).reshape(bsz * n * n, hdim)                 # pair (i, j)
    out = jnp.dot(h.astype(jnp.bfloat16), w2_ref[...],
                  preferred_element_type=jnp.float32) + b2_ref[...]
    o_ref[...] = out.reshape(bsz, n * n, -1).astype(o_ref.dtype)


def inter_pair_mlp(person_feature, w1a, w1b, b1, w2, b2):
    B, N, D = person_feature.shape
    Dout = w2.shape[1]
    full = pl.pallas_call(
        _inter_pair_kernel,
        out_shape=jax.ShapeDtypeStruct((B, N * N, Dout), person_feature.dtype),
        grid_spec=pltpu.PrefetchScalarGridSpec(
            num_scalar_prefetch=0,
            grid=(1,),
            in_specs=[
                pl.BlockSpec((B, N, D), lambda i: (0, 0, 0)),
                pl.BlockSpec(w1a.shape, lambda i: (0, 0)),
                pl.BlockSpec(w1b.shape, lambda i: (0, 0)),
                pl.BlockSpec(b1.shape, lambda i: (0, 0)),
                pl.BlockSpec(w2.shape, lambda i: (0, 0)),
                pl.BlockSpec(b2.shape, lambda i: (0, 0)),
            ],
            out_specs=pl.BlockSpec((B, N * N, Dout), lambda i: (0, 0, 0)),
        ),
        compiler_params=pltpu.CompilerParams(
            dimension_semantics=("arbitrary",),
            vmem_limit_bytes=48 * 1024 * 1024,
        ),
    )(person_feature, w1a, w1b, b1, w2, b2)
    # torch: relation_indexes = [N*i + j for i in range(N) for j in range(N) if j != i]
    idx = jnp.asarray([N * i + j for i in range(N) for j in range(N) if i != j],
                      dtype=jnp.int32)
    return full[:, idx, :]


# ----------------------------------------------------------------------------
# Full forward (reproduces torch view / repeat / index semantics)
# ----------------------------------------------------------------------------
def relation_trans_token_forward(params, person_feats_withT, token):
    B, N, T, D = person_feats_withT.shape
    S = N + 1
    G = B * T

    # torch: torch.cat([token, pf], 1).view(N+1, B, T, -1)  — .view is a raw
    # memory reinterpret (NOT a transpose); reshape reproduces it exactly.
    cat = jnp.concatenate([token, person_feats_withT], axis=1)        # (B, S, T, D)
    x3 = cat.reshape(S, G, D)                                         # free reinterpret
    x_grp = jnp.transpose(x3, (1, 0, 2))                              # (G, S, D)

    out_grp = rm_encoder_stack(x_grp, params["rm"])                   # (G, S, D) f32
    out3 = jnp.transpose(out_grp, (1, 0, 2)).reshape(S, B, T, D)
    person_feats_out = jax.lax.stop_gradient(out3)                    # torch .detach()

    pf = person_feats_out[1:]                                         # (N, B, T, D)
    token_out = person_feats_out[0].reshape(B, 1, T, D)

    # torch .view(B*N, -1) on the contiguous (N, B, T, D) tensor == row-major reshape.
    person_feature = mlp_pallas(pf.reshape(B * N, T * D),
                                *params["time_proj"]).reshape(B, N, D)
    person_feats_withT_out = pf.reshape(B, N, T, D)                   # torch .view semantics

    relation_feature = inter_pair_mlp(person_feature, *params["inter_proj"])

    return relation_feature, person_feats_withT_out, person_feature, token_out


# ----------------------------------------------------------------------------
# Deterministic parameter construction (stacked RM weights, fused QKV,
# matmul weights in bf16, biases/LayerNorm params in f32, interaction W1
# pre-split into top/bottom halves).
# ----------------------------------------------------------------------------
def init_params(key, D, F, T, num_encoder_layers):
    def nrm(k, shape):
        return (0.02 * jax.random.normal(k, shape, jnp.float32)).astype(jnp.bfloat16)

    keys = jax.random.split(key, 6 * num_encoder_layers + 8)
    ki = iter(keys)

    acc = {k: [] for k in _RM_PARAM_ORDER}
    for _ in range(num_encoder_layers):
        wq = nrm(next(ki), (D, D))
        wk = nrm(next(ki), (D, D))
        wv = nrm(next(ki), (D, D))
        acc["wqkv"].append(jnp.concatenate([wq, wk, wv], axis=1))
        acc["bqkv"].append(jnp.zeros((1, 3 * D), jnp.float32))
        acc["wo"].append(nrm(next(ki), (D, D)))
        acc["bo"].append(jnp.zeros((1, D), jnp.float32))
        acc["ln1_g"].append(jnp.ones((1, D), jnp.float32))
        acc["ln1_b"].append(jnp.zeros((1, D), jnp.float32))
        acc["w1"].append(nrm(next(ki), (D, F)))
        acc["b1"].append(jnp.zeros((1, F), jnp.float32))
        acc["w2"].append(nrm(next(ki), (F, D)))
        acc["b2"].append(jnp.zeros((1, D), jnp.float32))
        acc["ln2_g"].append(jnp.ones((1, D), jnp.float32))
        acc["ln2_b"].append(jnp.zeros((1, D), jnp.float32))
    rm = {k: jnp.stack(v) for k, v in acc.items()}

    time_proj = (nrm(next(ki), (T * D, D)), jnp.zeros((1, D), jnp.float32),
                 nrm(next(ki), (D, D)), jnp.zeros((1, D), jnp.float32))

    w1_inter = nrm(next(ki), (2 * D, D))
    inter_proj = (w1_inter[:D], w1_inter[D:], jnp.zeros((1, D), jnp.float32),
                  nrm(next(ki), (D, D)), jnp.zeros((1, D), jnp.float32))

    return {"rm": rm, "time_proj": time_proj, "inter_proj": inter_proj}


if __name__ == "__main__":
    # Small shapes consistent with the module: d_model == hidden_dim == 32.
    B, N, T, D = 2, 3, 4, 32
    F = 64                       # dim_feedforward (scaled down from 1024)
    num_encoder_layers = 2

    key = jax.random.PRNGKey(0)
    kp, kx, kt = jax.random.split(key, 3)

    params = init_params(kp, D, F, T, num_encoder_layers)
    person_feats_withT = jax.random.normal(kx, (B, N, T, D), jnp.float32)
    token = jax.random.normal(kt, (B, 1, T, D), jnp.float32)

    fwd = jax.jit(functools.partial(relation_trans_token_forward, params))
    rel_feat, pf_withT, person_feature, token_out = fwd(person_feats_withT, token)
    jax.block_until_ready((rel_feat, pf_withT, person_feature, token_out))

    assert rel_feat.shape == (B, N * (N - 1), D)
    assert pf_withT.shape == (B, N, T, D)
    assert person_feature.shape == (B, N, D)
    assert token_out.shape == (B, 1, T, D)
    assert bool(jnp.isfinite(rel_feat).all())
    assert bool(jnp.isfinite(person_feature).all())
    print("KERNEL_OK")
</pallas_src>

<mosaic_0001>
module attributes {stable_mosaic.version = 11 : i64} {
  func.func @_inter_pair_kernel(%arg0: i32, %arg1: memref<2x3x32xf32, #tpu.memory_space<vmem>>, %arg2: memref<32x32xbf16, #tpu.memory_space<vmem>>, %arg3: memref<32x32xbf16, #tpu.memory_space<vmem>>, %arg4: memref<1x32xf32, #tpu.memory_space<vmem>>, %arg5: memref<32x32xbf16, #tpu.memory_space<vmem>>, %arg6: memref<1x32xf32, #tpu.memory_space<vmem>>, %arg7: memref<2x9x32xf32, #tpu.memory_space<vmem>>) attributes {dimension_semantics = [#tpu.dimension_semantics<arbitrary>], iteration_bounds = array<i64: 1>, scalar_prefetch = 0 : i64, scratch_operands = 0 : i64, tpu.core_type = #tpu.core_type<tc>, window_params = [{pipeline_mode = #tpu.pipeline_mode<synchronous>, transform_indices = @transform_0, window_bounds = array<i64: 2, 3, 32>}, {pipeline_mode = #tpu.pipeline_mode<synchronous>, transform_indices = @transform_1, window_bounds = array<i64: 32, 32>}, {pipeline_mode = #tpu.pipeline_mode<synchronous>, transform_indices = @transform_2, window_bounds = array<i64: 32, 32>}, {pipeline_mode = #tpu.pipeline_mode<synchronous>, transform_indices = @transform_3, window_bounds = array<i64: 1, 32>}, {pipeline_mode = #tpu.pipeline_mode<synchronous>, transform_indices = @transform_4, window_bounds = array<i64: 32, 32>}, {pipeline_mode = #tpu.pipeline_mode<synchronous>, transform_indices = @transform_5, window_bounds = array<i64: 1, 32>}, {pipeline_mode = #tpu.pipeline_mode<synchronous>, transform_indices = @transform_6, window_bounds = array<i64: 2, 9, 32>}]} {
    %c0 = arith.constant 0 : index
    %c0_0 = arith.constant 0 : index
    %c0_1 = arith.constant 0 : index
    %0 = vector.load %arg1[%c0, %c0_0, %c0_1] : memref<2x3x32xf32, #tpu.memory_space<vmem>>, vector<2x3x32xf32>
    %1 = vector.shape_cast %0 : vector<2x3x32xf32> to vector<6x32xf32>
    %2 = arith.truncf %1 : vector<6x32xf32> to vector<6x32xbf16>
    %c0_2 = arith.constant 0 : index
    %c0_3 = arith.constant 0 : index
    %3 = vector.load %arg2[%c0_2, %c0_3] : memref<32x32xbf16, #tpu.memory_space<vmem>>, vector<32x32xbf16>
    %cst = arith.constant dense<0.000000e+00> : vector<6x32xf32>
    %4 = tpu.matmul %2, %3, %cst {dimension_numbers = #tpu.dot_dimension_numbers<[1], [0], [0], [1], [0, 0, 1, 1], [], []>} : vector<6x32xbf16>, vector<32x32xbf16>, vector<6x32xf32> -> vector<6x32xf32>
    %c0_4 = arith.constant 0 : index
    %c0_5 = arith.constant 0 : index
    %5 = vector.load %arg3[%c0_4, %c0_5] : memref<32x32xbf16, #tpu.memory_space<vmem>>, vector<32x32xbf16>
    %cst_6 = arith.constant dense<0.000000e+00> : vector<6x32xf32>
    %6 = tpu.matmul %2, %5, %cst_6 {dimension_numbers = #tpu.dot_dimension_numbers<[1], [0], [0], [1], [0, 0, 1, 1], [], []>} : vector<6x32xbf16>, vector<32x32xbf16>, vector<6x32xf32> -> vector<6x32xf32>
    %c0_7 = arith.constant 0 : index
    %c0_8 = arith.constant 0 : index
    %7 = vector.load %arg4[%c0_7, %c0_8] : memref<1x32xf32, #tpu.memory_space<vmem>>, vector<1x32xf32>
    %8 = vector.broadcast %7 : vector<1x32xf32> to vector<6x32xf32>
    %9 = arith.addf %6, %8 : vector<6x32xf32>
    %10 = vector.shape_cast %4 : vector<6x32xf32> to vector<2x3x1x32xf32>
    %11 = vector.shape_cast %9 : vector<6x32xf32> to vector<2x1x3x32xf32>
    %12 = vector.broadcast %10 : vector<2x3x1x32xf32> to vector<2x3x3x32xf32>
    %13 = vector.broadcast %11 : vector<2x1x3x32xf32> to vector<2x3x3x32xf32>
    %14 = arith.addf %12, %13 : vector<2x3x3x32xf32>
    %cst_9 = arith.constant 0.000000e+00 : f32
    %15 = vector.broadcast %cst_9 : f32 to vector<2x3x3x32xf32>
    %16 = arith.maximumf %14, %15 : vector<2x3x3x32xf32>
    %17 = vector.shape_cast %16 : vector<2x3x3x32xf32> to vector<18x32xf32>
    %18 = arith.truncf %17 : vector<18x32xf32> to vector<18x32xbf16>
    %c0_10 = arith.constant 0 : index
    %c0_11 = arith.constant 0 : index
    %19 = vector.load %arg5[%c0_10, %c0_11] : memref<32x32xbf16, #tpu.memory_space<vmem>>, vector<32x32xbf16>
    %cst_12 = arith.constant dense<0.000000e+00> : vector<18x32xf32>
    %20 = tpu.matmul %18, %19, %cst_12 {dimension_numbers = #tpu.dot_dimension_numbers<[1], [0], [0], [1], [0, 0, 1, 1], [], []>} : vector<18x32xbf16>, vector<32x32xbf16>, vector<18x32xf32> -> vector<18x32xf32>
    %c0_13 = arith.constant 0 : index
    %c0_14 = arith.constant 0 : index
    %21 = vector.load %arg6[%c0_13, %c0_14] : memref<1x32xf32, #tpu.memory_space<vmem>>, vector<1x32xf32>
    %22 = vector.broadcast %21 : vector<1x32xf32> to vector<18x32xf32>
    %23 = arith.addf %20, %22 : vector<18x32xf32>
    %24 = vector.shape_cast %23 : vector<18x32xf32> to vector<2x9x32xf32>
    %c0_15 = arith.constant 0 : index
    %c0_16 = arith.constant 0 : index
    %c0_17 = arith.constant 0 : index
    %25 = vector.load %arg7[%c0_15, %c0_16, %c0_17] : memref<2x9x32xf32, #tpu.memory_space<vmem>>, vector<2x9x32xf32>
    tpu.vector_store %arg7[%c0_15, %c0_16, %c0_17], %24 {strides = array<i32>} : memref<2x9x32xf32, #tpu.memory_space<vmem>>, vector<2x9x32xf32>,
    return
  }
  func.func @transform_0(%arg0: i32) -> (i32, i32, i32) {
    %c0_i32 = arith.constant 0 : i32
    %c0_i32_0 = arith.constant 0 : i32
    %c0_i32_1 = arith.constant 0 : i32
    %c0_i32_2 = arith.constant 0 : i32
    return %c0_i32, %c0_i32_0, %c0_i32_1 : i32, i32, i32
  }
  func.func @transform_1(%arg0: i32) -> (i32, i32) {
    %c0_i32 = arith.constant 0 : i32
    %c0_i32_0 = arith.constant 0 : i32
    %c0_i32_1 = arith.constant 0 : i32
    return %c0_i32, %c0_i32_0 : i32, i32
  }
  func.func @transform_2(%arg0: i32) -> (i32, i32) {
    %c0_i32 = arith.constant 0 : i32
    %c0_i32_0 = arith.constant 0 : i32
    %c0_i32_1 = arith.constant 0 : i32
    return %c0_i32, %c0_i32_0 : i32, i32
  }
  func.func @transform_3(%arg0: i32) -> (i32, i32) {
    %c0_i32 = arith.constant 0 : i32
    %c0_i32_0 = arith.constant 0 : i32
    %c0_i32_1 = arith.constant 0 : i32
    return %c0_i32, %c0_i32_0 : i32, i32
  }
  func.func @transform_4(%arg0: i32) -> (i32, i32) {
    %c0_i32 = arith.constant 0 : i32
    %c0_i32_0 = arith.constant 0 : i32
    %c0_i32_1 = arith.constant 0 : i32
    return %c0_i32, %c0_i32_0 : i32, i32
  }
  func.func @transform_5(%arg0: i32) -> (i32, i32) {
    %c0_i32 = arith.constant 0 : i32
    %c0_i32_0 = arith.constant 0 : i32
    %c0_i32_1 = arith.constant 0 : i32
    return %c0_i32, %c0_i32_0 : i32, i32
  }
  func.func @transform_6(%arg0: i32) -> (i32, i32, i32) {
    %c0_i32 = arith.constant 0 : i32
    %c0_i32_0 = arith.constant 0 : i32
    %c0_i32_1 = arith.constant 0 : i32
    %c0_i32_2 = arith.constant 0 : i32
    return %c0_i32, %c0_i32_0, %c0_i32_1 : i32, i32, i32
  }
}

module attributes {stable_mosaic.version = 11 : i64} {
  func.func @_encoder_stack_kernel(%arg0: i32, %arg1: i32, %arg2: memref<8x4x32xf32, #tpu.memory_space<vmem>>, %arg3: memref<1x32x96xbf16, #tpu.memory_space<vmem>>, %arg4: memref<1x1x96xf32, #tpu.memory_space<vmem>>, %arg5: memref<1x32x32xbf16, #tpu.memory_space<vmem>>, %arg6: memref<1x1x32xf32, #tpu.memory_space<vmem>>, %arg7: memref<1x1x32xf32, #tpu.memory_space<vmem>>, %arg8: memref<1x1x32xf32, #tpu.memory_space<vmem>>, %arg9: memref<1x32x64xbf16, #tpu.memory_space<vmem>>, %arg10: memref<1x1x64xf32, #tpu.memory_space<vmem>>, %arg11: memref<1x64x32xbf16, #tpu.memory_space<vmem>>, %arg12: memref<1x1x32xf32, #tpu.memory_space<vmem>>, %arg13: memref<1x1x32xf32, #tpu.memory_space<vmem>>, %arg14: memref<1x1x32xf32, #tpu.memory_space<vmem>>, %arg15: memref<8x4x32xf32, #tpu.memory_space<vmem>>) attributes {dimension_semantics = [#tpu.dimension_semantics<parallel>, #tpu.dimension_semantics<arbitrary>], iteration_bounds = array<i64: 1, 2>, scalar_prefetch = 0 : i64, scratch_operands = 0 : i64, tpu.core_type = #tpu.core_type<tc>, window_params = [{transform_indices = @transform_0, window_bounds = array<i64: 8, 4, 32>}, {transform_indices = @transform_1, window_bounds = array<i64: 1, 32, 96>}, {transform_indices = @transform_2, window_bounds = array<i64: 1, 1, 96>}, {transform_indices = @transform_3, window_bounds = array<i64: 1, 32, 32>}, {transform_indices = @transform_4, window_bounds = array<i64: 1, 1, 32>}, {transform_indices = @transform_5, window_bounds = array<i64: 1, 1, 32>}, {transform_indices = @transform_6, window_bounds = array<i64: 1, 1, 32>}, {transform_indices = @transform_7, window_bounds = array<i64: 1, 32, 64>}, {transform_indices = @transform_8, window_bounds = array<i64: 1, 1, 64>}, {transform_indices = @transform_9, window_bounds = array<i64: 1, 64, 32>}, {transform_indices = @transform_10, window_bounds = array<i64: 1, 1, 32>}, {transform_indices = @transform_11, window_bounds = array<i64: 1, 1, 32>}, {transform_indices = @transform_12, window_bounds = array<i64: 1, 1, 32>}, {transform_indices = @transform_13, window_bounds = array<i64: 8, 4, 32>}]} {
    %c0_i32 = arith.constant 0 : i32
    %0 = arith.cmpi eq, %arg1, %c0_i32 : i32
    %1 = arith.extui %0 : i1 to i32
    %c0_i32_0 = arith.constant 0 : i32
    %2 = arith.cmpi ne, %1, %c0_i32_0 : i32
    scf.if %2 {
      %c0_61 = arith.constant 0 : index
      %c0_62 = arith.constant 0 : index
      %c0_63 = arith.constant 0 : index
      %120 = vector.load %arg2[%c0_61, %c0_62, %c0_63] : memref<8x4x32xf32, #tpu.memory_space<vmem>>, vector<8x4x32xf32>
      %c0_64 = arith.constant 0 : index
      %c0_65 = arith.constant 0 : index
      %c0_66 = arith.constant 0 : index
      %121 = vector.load %arg15[%c0_64, %c0_65, %c0_66] : memref<8x4x32xf32, #tpu.memory_space<vmem>>, vector<8x4x32xf32>
      tpu.vector_store %arg15[%c0_64, %c0_65, %c0_66], %120 {strides = array<i32>} : memref<8x4x32xf32, #tpu.memory_space<vmem>>, vector<8x4x32xf32>,
    } else {
    }
    %c0 = arith.constant 0 : index
    %c0_1 = arith.constant 0 : index
    %c0_2 = arith.constant 0 : index
    %3 = vector.load %arg15[%c0, %c0_1, %c0_2] : memref<8x4x32xf32, #tpu.memory_space<vmem>>, vector<8x4x32xf32>
    %4 = vector.shape_cast %3 : vector<8x4x32xf32> to vector<32x32xf32>
    %5 = arith.truncf %4 : vector<32x32xf32> to vector<32x32xbf16>
    %c0_3 = arith.constant 0 : index
    %c0_4 = arith.constant 0 : index
    %c0_5 = arith.constant 0 : index
    %6 = vector.load %arg3[%c0_3, %c0_4, %c0_5] : memref<1x32x96xbf16, #tpu.memory_space<vmem>>, vector<1x32x96xbf16>
    %7 = vector.shape_cast %6 : vector<1x32x96xbf16> to vector<32x96xbf16>
    %cst = arith.constant dense<0.000000e+00> : vector<32x96xf32>
    %8 = tpu.matmul %5, %7, %cst {dimension_numbers = #tpu.dot_dimension_numbers<[1], [0], [0], [1], [0, 0, 1, 1], [], []>} : vector<32x32xbf16>, vector<32x96xbf16>, vector<32x96xf32> -> vector<32x96xf32>
    %c0_6 = arith.constant 0 : index
    %c0_7 = arith.constant 0 : index
    %c0_8 = arith.constant 0 : index
    %9 = vector.load %arg4[%c0_6, %c0_7, %c0_8] : memref<1x1x96xf32, #tpu.memory_space<vmem>>, vector<1x1x96xf32>
    %10 = vector.shape_cast %9 : vector<1x1x96xf32> to vector<1x96xf32>
    %11 = vector.broadcast %10 : vector<1x96xf32> to vector<32x96xf32>
    %12 = arith.addf %8, %11 : vector<32x96xf32>
    %13 = vector.extract_strided_slice %12 {offsets = [0, 0], sizes = [32, 32], strides = [1, 1]} : vector<32x96xf32> to vector<32x32xf32>
    %cst_9 = arith.constant 0.176776692 : f32
    %14 = vector.broadcast %cst_9 : f32 to vector<32x32xf32>
    %15 = arith.mulf %13, %14 : vector<32x32xf32>
    %16 = arith.truncf %15 : vector<32x32xf32> to vector<32x32xbf16>
    %17 = vector.shape_cast %16 : vector<32x32xbf16> to vector<8x4x32xbf16>
    %18 = vector.extract_strided_slice %12 {offsets = [0, 32], sizes = [32, 32], strides = [1, 1]} : vector<32x96xf32> to vector<32x32xf32>
    %19 = arith.truncf %18 : vector<32x32xf32> to vector<32x32xbf16>
    %20 = vector.shape_cast %19 : vector<32x32xbf16> to vector<8x4x32xbf16>
    %21 = vector.extract_strided_slice %12 {offsets = [0, 64], sizes = [32, 32], strides = [1, 1]} : vector<32x96xf32> to vector<32x32xf32>
    %22 = arith.truncf %21 : vector<32x32xf32> to vector<32x32xbf16>
    %23 = vector.shape_cast %22 : vector<32x32xbf16> to vector<8x4x32xbf16>
    "tpu.trace_start"() <{level = 10 : i32, message = "gqd,gkd->gqk"}> : () -> ()
    %cst_10 = arith.constant dense<0.000000e+00> : vector<8x4x4xf32>
    %24 = tpu.matmul %17, %20, %cst_10 {dimension_numbers = #tpu.dot_dimension_numbers<[2], [2], [1], [1], [0, 0, 0, 1, 1, 1], [0], [0]>} : vector<8x4x32xbf16>, vector<8x4x32xbf16>, vector<8x4x4xf32> -> vector<8x4x4xf32>
    "tpu.trace_stop"() : () -> ()
    %cst_11 = arith.constant dense<0xFF800000> : vector<8x4xf32>
    %25 = vector.multi_reduction <maximumf>, %24, %cst_11 [2] : vector<8x4x4xf32> to vector<8x4xf32>
    %26 = vector.shape_cast %25 : vector<8x4xf32> to vector<8x4x1xf32>
    %27 = vector.broadcast %26 : vector<8x4x1xf32> to vector<8x4x4xf32>
    %28 = arith.subf %24, %27 : vector<8x4x4xf32>
    %29 = math.exp %28 : vector<8x4x4xf32>
    %cst_12 = arith.constant dense<0.000000e+00> : vector<8x4xf32>
    %30 = vector.multi_reduction <add>, %29, %cst_12 [2] : vector<8x4x4xf32> to vector<8x4xf32>
    %31 = vector.shape_cast %30 : vector<8x4xf32> to vector<8x4x1xf32>
    %32 = tpu.reciprocal %31 {approx = true} : vector<8x4x1xf32> -> vector<8x4x1xf32>
    %33 = vector.broadcast %32 : vector<8x4x1xf32> to vector<8x4x4xf32>
    %34 = arith.mulf %29, %33 : vector<8x4x4xf32>
    %35 = arith.truncf %34 : vector<8x4x4xf32> to vector<8x4x4xbf16>
    "tpu.trace_start"() <{level = 10 : i32, message = "gqk,gkd->gqd"}> : () -> ()
    %cst_13 = arith.constant dense<0.000000e+00> : vector<8x4x32xf32>
    %36 = tpu.matmul %35, %23, %cst_13 {dimension_numbers = #tpu.dot_dimension_numbers<[2], [1], [1], [2], [0, 0, 0, 1, 1, 2], [0], [0]>} : vector<8x4x4xbf16>, vector<8x4x32xbf16>, vector<8x4x32xf32> -> vector<8x4x32xf32>
    "tpu.trace_stop"() : () -> ()
    %37 = vector.shape_cast %36 : vector<8x4x32xf32> to vector<32x32xf32>
    %38 = arith.truncf %37 : vector<32x32xf32> to vector<32x32xbf16>
    %c0_14 = arith.constant 0 : index
    %c0_15 = arith.constant 0 : index
    %c0_16 = arith.constant 0 : index
    %39 = vector.load %arg5[%c0_14, %c0_15, %c0_16] : memref<1x32x32xbf16, #tpu.memory_space<vmem>>, vector<1x32x32xbf16>
    %40 = vector.shape_cast %39 : vector<1x32x32xbf16> to vector<32x32xbf16>
    %cst_17 = arith.constant dense<0.000000e+00> : vector<32x32xf32>
    %41 = tpu.matmul %38, %40, %cst_17 {dimension_numbers = #tpu.dot_dimension_numbers<[1], [0], [0], [1], [0, 0, 1, 1], [], []>} : vector<32x32xbf16>, vector<32x32xbf16>, vector<32x32xf32> -> vector<32x32xf32>
    %c0_18 = arith.constant 0 : index
    %c0_19 = arith.constant 0 : index
    %c0_20 = arith.constant 0 : index
    %42 = vector.load %arg6[%c0_18, %c0_19, %c0_20] : memref<1x1x32xf32, #tpu.memory_space<vmem>>, vector<1x1x32xf32>
    %43 = vector.shape_cast %42 : vector<1x1x32xf32> to vector<1x32xf32>
    %44 = vector.broadcast %43 : vector<1x32xf32> to vector<32x32xf32>
    %45 = arith.addf %41, %44 : vector<32x32xf32>
    %46 = arith.addf %4, %45 : vector<32x32xf32>
    %cst_21 = arith.constant dense<0.000000e+00> : vector<32xf32>
    %47 = vector.multi_reduction <add>, %46, %cst_21 [1] : vector<32x32xf32> to vector<32xf32>
    %48 = vector.shape_cast %47 : vector<32xf32> to vector<32x1xf32>
    %cst_22 = arith.constant 3.200000e+01 : f32
    %49 = vector.broadcast %cst_22 : f32 to vector<32x1xf32>
    %50 = arith.divf %48, %49 : vector<32x1xf32>
    %51 = vector.broadcast %50 : vector<32x1xf32> to vector<32x32xf32>
    %52 = arith.subf %46, %51 : vector<32x32xf32>
    %53 = arith.mulf %52, %52 : vector<32x32xf32>
    %cst_23 = arith.constant dense<0.000000e+00> : vector<32xf32>
    %54 = vector.multi_reduction <add>, %53, %cst_23 [1] : vector<32x32xf32> to vector<32xf32>
    %55 = vector.shape_cast %54 : vector<32xf32> to vector<32x1xf32>
    %cst_24 = arith.constant 3.200000e+01 : f32
    %56 = vector.broadcast %cst_24 : f32 to vector<32x1xf32>
    %57 = arith.divf %55, %56 : vector<32x1xf32>
    %58 = vector.broadcast %50 : vector<32x1xf32> to vector<32x32xf32>
    %59 = arith.subf %46, %58 : vector<32x32xf32>
    %cst_25 = arith.constant 9.99999974E-6 : f32
    %60 = vector.broadcast %cst_25 : f32 to vector<32x1xf32>
    %61 = arith.addf %57, %60 : vector<32x1xf32>
    %62 = math.rsqrt %61 : vector<32x1xf32>
    %63 = vector.broadcast %62 : vector<32x1xf32> to vector<32x32xf32>
    %64 = arith.mulf %59, %63 : vector<32x32xf32>
    %c0_26 = arith.constant 0 : index
    %c0_27 = arith.constant 0 : index
    %c0_28 = arith.constant 0 : index
    %65 = vector.load %arg7[%c0_26, %c0_27, %c0_28] : memref<1x1x32xf32, #tpu.memory_space<vmem>>, vector<1x1x32xf32>
    %66 = vector.shape_cast %65 : vector<1x1x32xf32> to vector<1x32xf32>
    %67 = vector.broadcast %66 : vector<1x32xf32> to vector<32x32xf32>
    %68 = arith.mulf %64, %67 : vector<32x32xf32>
    %c0_29 = arith.constant 0 : index
    %c0_30 = arith.constant 0 : index
    %c0_31 = arith.constant 0 : index
    %69 = vector.load %arg8[%c0_29, %c0_30, %c0_31] : memref<1x1x32xf32, #tpu.memory_space<vmem>>, vector<1x1x32xf32>
    %70 = vector.shape_cast %69 : vector<1x1x32xf32> to vector<1x32xf32>
    %71 = vector.broadcast %70 : vector<1x32xf32> to vector<32x32xf32>
    %72 = arith.addf %68, %71 : vector<32x32xf32>
    %73 = arith.truncf %72 : vector<32x32xf32> to vector<32x32xbf16>
    %c0_32 = arith.constant 0 : index
    %c0_33 = arith.constant 0 : index
    %c0_34 = arith.constant 0 : index
    %74 = vector.load %arg9[%c0_32, %c0_33, %c0_34] : memref<1x32x64xbf16, #tpu.memory_space<vmem>>, vector<1x32x64xbf16>
    %75 = vector.shape_cast %74 : vector<1x32x64xbf16> to vector<32x64xbf16>
    %cst_35 = arith.constant dense<0.000000e+00> : vector<32x64xf32>
    %76 = tpu.matmul %73, %75, %cst_35 {dimension_numbers = #tpu.dot_dimension_numbers<[1], [0], [0], [1], [0, 0, 1, 1], [], []>} : vector<32x32xbf16>, vector<32x64xbf16>, vector<32x64xf32> -> vector<32x64xf32>
    %c0_36 = arith.constant 0 : index
    %c0_37 = arith.constant 0 : index
    %c0_38 = arith.constant 0 : index
    %77 = vector.load %arg10[%c0_36, %c0_37, %c0_38] : memref<1x1x64xf32, #tpu.memory_space<vmem>>, vector<1x1x64xf32>
    %78 = vector.shape_cast %77 : vector<1x1x64xf32> to vector<1x64xf32>
    %79 = vector.broadcast %78 : vector<1x64xf32> to vector<32x64xf32>
    %80 = arith.addf %76, %79 : vector<32x64xf32>
    %cst_39 = arith.constant 0.000000e+00 : f32
    %81 = vector.broadcast %cst_39 : f32 to vector<32x64xf32>
    %82 = arith.maximumf %80, %81 : vector<32x64xf32>
    %83 = arith.truncf %82 : vector<32x64xf32> to vector<32x64xbf16>
    %c0_40 = arith.constant 0 : index
    %c0_41 = arith.constant 0 : index
    %c0_42 = arith.constant 0 : index
    %84 = vector.load %arg11[%c0_40, %c0_41, %c0_42] : memref<1x64x32xbf16, #tpu.memory_space<vmem>>, vector<1x64x32xbf16>
    %85 = vector.shape_cast %84 : vector<1x64x32xbf16> to vector<64x32xbf16>
    %cst_43 = arith.constant dense<0.000000e+00> : vector<32x32xf32>
    %86 = tpu.matmul %83, %85, %cst_43 {dimension_numbers = #tpu.dot_dimension_numbers<[1], [0], [0], [1], [0, 0, 1, 1], [], []>} : vector<32x64xbf16>, vector<64x32xbf16>, vector<32x32xf32> -> vector<32x32xf32>
    %c0_44 = arith.constant 0 : index
    %c0_45 = arith.constant 0 : index
    %c0_46 = arith.constant 0 : index
    %87 = vector.load %arg12[%c0_44, %c0_45, %c0_46] : memref<1x1x32xf32, #tpu.memory_space<vmem>>, vector<1x1x32xf32>
    %88 = vector.shape_cast %87 : vector<1x1x32xf32> to vector<1x32xf32>
    %89 = vector.broadcast %88 : vector<1x32xf32> to vector<32x32xf32>
    %90 = arith.addf %86, %89 : vector<32x32xf32>
    %91 = arith.addf %72, %90 : vector<32x32xf32>
    %cst_47 = arith.constant dense<0.000000e+00> : vector<32xf32>
    %92 = vector.multi_reduction <add>, %91, %cst_47 [1] : vector<32x32xf32> to vector<32xf32>
    %93 = vector.shape_cast %92 : vector<32xf32> to vector<32x1xf32>
    %cst_48 = arith.constant 3.200000e+01 : f32
    %94 = vector.broadcast %cst_48 : f32 to vector<32x1xf32>
    %95 = arith.divf %93, %94 : vector<32x1xf32>
    %96 = vector.broadcast %95 : vector<32x1xf32> to vector<32x32xf32>
    %97 = arith.subf %91, %96 : vector<32x32xf32>
    %98 = arith.mulf %97, %97 : vector<32x32xf32>
    %cst_49 = arith.constant dense<0.000000e+00> : vector<32xf32>
    %99 = vector.multi_reduction <add>, %98, %cst_49 [1] : vector<32x32xf32> to vector<32xf32>
    %100 = vector.shape_cast %99 : vector<32xf32> to vector<32x1xf32>
    %cst_50 = arith.constant 3.200000e+01 : f32
    %101 = vector.broadcast %cst_50 : f32 to vector<32x1xf32>
    %102 = arith.divf %100, %101 : vector<32x1xf32>
    %103 = vector.broadcast %95 : vector<32x1xf32> to vector<32x32xf32>
    %104 = arith.subf %91, %103 : vector<32x32xf32>
    %cst_51 = arith.constant 9.99999974E-6 : f32
    %105 = vector.broadcast %cst_51 : f32 to vector<32x1xf32>
    %106 = arith.addf %102, %105 : vector<32x1xf32>
    %107 = math.rsqrt %106 : vector<32x1xf32>
    %108 = vector.broadcast %107 : vector<32x1xf32> to vector<32x32xf32>
    %109 = arith.mulf %104, %108 : vector<32x32xf32>
    %c0_52 = arith.constant 0 : index
    %c0_53 = arith.constant 0 : index
    %c0_54 = arith.constant 0 : index
    %110 = vector.load %arg13[%c0_52, %c0_53, %c0_54] : memref<1x1x32xf32, #tpu.memory_space<vmem>>, vector<1x1x32xf32>
    %111 = vector.shape_cast %110 : vector<1x1x32xf32> to vector<1x32xf32>
    %112 = vector.broadcast %111 : vector<1x32xf32> to vector<32x32xf32>
    %113 = arith.mulf %109, %112 : vector<32x32xf32>
    %c0_55 = arith.constant 0 : index
    %c0_56 = arith.constant 0 : index
    %c0_57 = arith.constant 0 : index
    %114 = vector.load %arg14[%c0_55, %c0_56, %c0_57] : memref<1x1x32xf32, #tpu.memory_space<vmem>>, vector<1x1x32xf32>
    %115 = vector.shape_cast %114 : vector<1x1x32xf32> to vector<1x32xf32>
    %116 = vector.broadcast %115 : vector<1x32xf32> to vector<32x32xf32>
    %117 = arith.addf %113, %116 : vector<32x32xf32>
    %118 = vector.shape_cast %117 : vector<32x32xf32> to vector<8x4x32xf32>
    %c0_58 = arith.constant 0 : index
    %c0_59 = arith.constant 0 : index
    %c0_60 = arith.constant 0 : index
    %119 = vector.load %arg15[%c0_58, %c0_59, %c0_60] : memref<8x4x32xf32, #tpu.memory_space<vmem>>, vector<8x4x32xf32>
    tpu.vector_store %arg15[%c0_58, %c0_59, %c0_60], %118 {strides = array<i32>} : memref<8x4x32xf32, #tpu.memory_space<vmem>>, vector<8x4x32xf32>,
    return
  }
  func.func @transform_0(%arg0: i32, %arg1: i32) -> (i32, i32, i32) {
    %c0_i32 = arith.constant 0 : i32
    %c0_i32_0 = arith.constant 0 : i32
    %c0_i32_1 = arith.constant 0 : i32
    return %arg0, %c0_i32, %c0_i32_0 : i32, i32, i32
  }
  func.func @transform_1(%arg0: i32, %arg1: i32) -> (i32, i32, i32) {
    %c0_i32 = arith.constant 0 : i32
    %c0_i32_0 = arith.constant 0 : i32
    %c0_i32_1 = arith.constant 0 : i32
    return %arg1, %c0_i32, %c0_i32_0 : i32, i32, i32
  }
  func.func @transform_2(%arg0: i32, %arg1: i32) -> (i32, i32, i32) {
    %c0_i32 = arith.constant 0 : i32
    %c0_i32_0 = arith.constant 0 : i32
    %c0_i32_1 = arith.constant 0 : i32
    return %arg1, %c0_i32, %c0_i32_0 : i32, i32, i32
  }
  func.func @transform_3(%arg0: i32, %arg1: i32) -> (i32, i32, i32) {
    %c0_i32 = arith.constant 0 : i32
    %c0_i32_0 = arith.constant 0 : i32
    %c0_i32_1 = arith.constant 0 : i32
    return %arg1, %c0_i32, %c0_i32_0 : i32, i32, i32
  }
  func.func @transform_4(%arg0: i32, %arg1: i32) -> (i32, i32, i32) {
    %c0_i32 = arith.constant 0 : i32
    %c0_i32_0 = arith.constant 0 : i32
    %c0_i32_1 = arith.constant 0 : i32
    return %arg1, %c0_i32, %c0_i32_0 : i32, i32, i32
  }
  func.func @transform_5(%arg0: i32, %arg1: i32) -> (i32, i32, i32) {
    %c0_i32 = arith.constant 0 : i32
    %c0_i32_0 = arith.constant 0 : i32
    %c0_i32_1 = arith.constant 0 : i32
    return %arg1, %c0_i32, %c0_i32_0 : i32, i32, i32
  }
  func.func @transform_6(%arg0: i32, %arg1: i32) -> (i32, i32, i32) {
    %c0_i32 = arith.constant 0 : i32
    %c0_i32_0 = arith.constant 0 : i32
    %c0_i32_1 = arith.constant 0 : i32
    return %arg1, %c0_i32, %c0_i32_0 : i32, i32, i32
  }
  func.func @transform_7(%arg0: i32, %arg1: i32) -> (i32, i32, i32) {
    %c0_i32 = arith.constant 0 : i32
    %c0_i32_0 = arith.constant 0 : i32
    %c0_i32_1 = arith.constant 0 : i32
    return %arg1, %c0_i32, %c0_i32_0 : i32, i32, i32
  }
  func.func @transform_8(%arg0: i32, %arg1: i32) -> (i32, i32, i32) {
    %c0_i32 = arith.constant 0 : i32
    %c0_i32_0 = arith.constant 0 : i32
    %c0_i32_1 = arith.constant 0 : i32
    return %arg1, %c0_i32, %c0_i32_0 : i32, i32, i32
  }
  func.func @transform_9(%arg0: i32, %arg1: i32) -> (i32, i32, i32) {
    %c0_i32 = arith.constant 0 : i32
    %c0_i32_0 = arith.constant 0 : i32
    %c0_i32_1 = arith.constant 0 : i32
    return %arg1, %c0_i32, %c0_i32_0 : i32, i32, i32
  }
  func.func @transform_10(%arg0: i32, %arg1: i32) -> (i32, i32, i32) {
    %c0_i32 = arith.constant 0 : i32
    %c0_i32_0 = arith.constant 0 : i32
    %c0_i32_1 = arith.constant 0 : i32
    return %arg1, %c0_i32, %c0_i32_0 : i32, i32, i32
  }
  func.func @transform_11(%arg0: i32, %arg1: i32) -> (i32, i32, i32) {
    %c0_i32 = arith.constant 0 : i32
    %c0_i32_0 = arith.constant 0 : i32
    %c0_i32_1 = arith.constant 0 : i32
    return %arg1, %c0_i32, %c0_i32_0 : i32, i32, i32
  }
  func.func @transform_12(%arg0: i32, %arg1: i32) -> (i32, i32, i32) {
    %c0_i32 = arith.constant 0 : i32
    %c0_i32_0 = arith.constant 0 : i32
    %c0_i32_1 = arith.constant 0 : i32
    return %arg1, %c0_i32, %c0_i32_0 : i32, i32, i32
  }
  func.func @transform_13(%arg0: i32, %arg1: i32) -> (i32, i32, i32) {
    %c0_i32 = arith.constant 0 : i32
    %c0_i32_0 = arith.constant 0 : i32
    %c0_i32_1 = arith.constant 0 : i32
    return %arg0, %c0_i32, %c0_i32_0 : i32, i32, i32
  }
}

module attributes {stable_mosaic.version = 11 : i64} {
  func.func @_mlp_kernel(%arg0: i32, %arg1: memref<6x128xf32, #tpu.memory_space<vmem>>, %arg2: memref<128x32xbf16, #tpu.memory_space<vmem>>, %arg3: memref<1x32xf32, #tpu.memory_space<vmem>>, %arg4: memref<32x32xbf16, #tpu.memory_space<vmem>>, %arg5: memref<1x32xf32, #tpu.memory_space<vmem>>, %arg6: memref<6x32xf32, #tpu.memory_space<vmem>>) attributes {dimension_semantics = [#tpu.dimension_semantics<parallel>], iteration_bounds = array<i64: 1>, scalar_prefetch = 0 : i64, scratch_operands = 0 : i64, tpu.core_type = #tpu.core_type<tc>, window_params = [{transform_indices = @transform_0, window_bounds = array<i64: 6, 128>}, {pipeline_mode = #tpu.pipeline_mode<synchronous>, transform_indices = @transform_1, window_bounds = array<i64: 128, 32>}, {pipeline_mode = #tpu.pipeline_mode<synchronous>, transform_indices = @transform_2, window_bounds = array<i64: 1, 32>}, {pipeline_mode = #tpu.pipeline_mode<synchronous>, transform_indices = @transform_3, window_bounds = array<i64: 32, 32>}, {pipeline_mode = #tpu.pipeline_mode<synchronous>, transform_indices = @transform_4, window_bounds = array<i64: 1, 32>}, {transform_indices = @transform_5, window_bounds = array<i64: 6, 32>}]} {
    %c0 = arith.constant 0 : index
    %c0_0 = arith.constant 0 : index
    %0 = vector.load %arg1[%c0, %c0_0] : memref<6x128xf32, #tpu.memory_space<vmem>>, vector<6x128xf32>
    %1 = arith.truncf %0 : vector<6x128xf32> to vector<6x128xbf16>
    %c0_1 = arith.constant 0 : index
    %c0_2 = arith.constant 0 : index
    %2 = vector.load %arg2[%c0_1, %c0_2] : memref<128x32xbf16, #tpu.memory_space<vmem>>, vector<128x32xbf16>
    %cst = arith.constant dense<0.000000e+00> : vector<6x32xf32>
    %3 = tpu.matmul %1, %2, %cst {dimension_numbers = #tpu.dot_dimension_numbers<[1], [0], [0], [1], [0, 0, 1, 1], [], []>} : vector<6x128xbf16>, vector<128x32xbf16>, vector<6x32xf32> -> vector<6x32xf32>
    %c0_3 = arith.constant 0 : index
    %c0_4 = arith.constant 0 : index
    %4 = vector.load %arg3[%c0_3, %c0_4] : memref<1x32xf32, #tpu.memory_space<vmem>>, vector<1x32xf32>
    %5 = vector.broadcast %4 : vector<1x32xf32> to vector<6x32xf32>
    %6 = arith.addf %3, %5 : vector<6x32xf32>
    %cst_5 = arith.constant 0.000000e+00 : f32
    %7 = vector.broadcast %cst_5 : f32 to vector<6x32xf32>
    %8 = arith.maximumf %6, %7 : vector<6x32xf32>
    %9 = arith.truncf %8 : vector<6x32xf32> to vector<6x32xbf16>
    %c0_6 = arith.constant 0 : index
    %c0_7 = arith.constant 0 : index
    %10 = vector.load %arg4[%c0_6, %c0_7] : memref<32x32xbf16, #tpu.memory_space<vmem>>, vector<32x32xbf16>
    %cst_8 = arith.constant dense<0.000000e+00> : vector<6x32xf32>
    %11 = tpu.matmul %9, %10, %cst_8 {dimension_numbers = #tpu.dot_dimension_numbers<[1], [0], [0], [1], [0, 0, 1, 1], [], []>} : vector<6x32xbf16>, vector<32x32xbf16>, vector<6x32xf32> -> vector<6x32xf32>
    %c0_9 = arith.constant 0 : index
    %c0_10 = arith.constant 0 : index
    %12 = vector.load %arg5[%c0_9, %c0_10] : memref<1x32xf32, #tpu.memory_space<vmem>>, vector<1x32xf32>
    %13 = vector.broadcast %12 : vector<1x32xf32> to vector<6x32xf32>
    %14 = arith.addf %11, %13 : vector<6x32xf32>
    %c0_11 = arith.constant 0 : index
    %c0_12 = arith.constant 0 : index
    %15 = vector.load %arg6[%c0_11, %c0_12] : memref<6x32xf32, #tpu.memory_space<vmem>>, vector<6x32xf32>
    tpu.vector_store %arg6[%c0_11, %c0_12], %14 {strides = array<i32>} : memref<6x32xf32, #tpu.memory_space<vmem>>, vector<6x32xf32>,
    return
  }
  func.func @transform_0(%arg0: i32) -> (i32, i32) {
    %c0_i32 = arith.constant 0 : i32
    %c0_i32_0 = arith.constant 0 : i32
    return %arg0, %c0_i32 : i32, i32
  }
  func.func @transform_1(%arg0: i32) -> (i32, i32) {
    %c0_i32 = arith.constant 0 : i32
    %c0_i32_0 = arith.constant 0 : i32
    %c0_i32_1 = arith.constant 0 : i32
    return %c0_i32, %c0_i32_0 : i32, i32
  }
  func.func @transform_2(%arg0: i32) -> (i32, i32) {
    %c0_i32 = arith.constant 0 : i32
    %c0_i32_0 = arith.constant 0 : i32
    %c0_i32_1 = arith.constant 0 : i32
    return %c0_i32, %c0_i32_0 : i32, i32
  }
  func.func @transform_3(%arg0: i32) -> (i32, i32) {
    %c0_i32 = arith.constant 0 : i32
    %c0_i32_0 = arith.constant 0 : i32
    %c0_i32_1 = arith.constant 0 : i32
    return %c0_i32, %c0_i32_0 : i32, i32
  }
  func.func @transform_4(%arg0: i32) -> (i32, i32) {
    %c0_i32 = arith.constant 0 : i32
    %c0_i32_0 = arith.constant 0 : i32
    %c0_i32_1 = arith.constant 0 : i32
    return %c0_i32, %c0_i32_0 : i32, i32
  }
  func.func @transform_5(%arg0: i32) -> (i32, i32) {
    %c0_i32 = arith.constant 0 : i32
    %c0_i32_0 = arith.constant 0 : i32
    return %arg0, %c0_i32 : i32, i32
  }
}

</mosaic_0001>

<bundles_post_ra>
// kernel: relation_trans_token_forward.4
= control target key start
LH: loop header
LB: loop body
LE: loop exit
PB: predicated region body
PF: predicated region fallthrough
CT: control target
= control target key end

     0   :  { %v274_v0 = vmov 0.0   ;;  %vm275_vm0 = vmmov 0   ;;  %vm159_vm1 = vcmask 261120   ;;  %vm203_vm2 = vcmask 259072   ;;  %s348_s1 = inlined_call_operand.vmem [shape: bf16[128,32], index: 1, kind: input, shape index: {}]   ;;  %s349_s0 = inlined_call_operand.vmem [shape: f32[6,128], index: 0, kind: input, shape index: {}]   ;;  %s350_s3 = inlined_call_operand.vmem [shape: bf16[32,32], index: 3, kind: input, shape index: {}]   ;;  %s351_s2 = inlined_call_operand.vmem [shape: f32[1,32], index: 2, kind: input, shape index: {}, may-alias: {2,4}]   ;;  %s352_s4 = inlined_call_operand.vmem [shape: f32[1,32], index: 4, kind: input, shape index: {}, may-alias: {2,4}]   ;;  %s353_s5 = inlined_call_operand.vmem [shape: f32[6,32], index: 5, kind: output, shape index: {}]  }
   0x1   :  { %234 = vmatprep.subr.bf16.mxu0 %v274_v0  ;;  %v264_v1 = vld [vmem:[%s348_s1 + $0x38] sm:$0xff]   ;;  %250 = vmatprep.mubr.msk.bf16.mxu0 %vm275_vm0, %v274_v0  ;;  %v265_v2 = vld [vmem:[%s348_s1 + $0x30] sm:$0xff]   ;;  %v266_v3 = vld [vmem:[%s348_s1 + $0x28] sm:$0xff]  }
   0x2   :  { %254 = vmatprep.subr.bf16.mxu1 %v274_v0  ;;  %258 = vmatprep.mubr.msk.bf16.mxu1 %vm275_vm0, %v274_v0  ;;  %v267_v4 = vld [vmem:[%s348_s1 + $0x20] sm:$0xff]   ;;  %v268_v5 = vld [vmem:[%s348_s1 + $0x18] sm:$0xff]   ;;  %v269_v6 = vld [vmem:[%s348_s1 + $0x10] sm:$0xff]  }
   0x3   :  { %235 = vmatpush3.bf16.msra.mxu0 %v264_v1  ;;  %v270_v7 = vld [vmem:[%s348_s1 + $0x8] sm:$0xff]   ;;  %v271_v8 = vld [vmem:[%s348_s1] sm:$0xff]  }
   0x4   :  { %236 = vmatprep.subr.bf16.mxu0 %v274_v0  ;;  %v21_v9 = vld [vmem:[%s349_s0] sm:$0x3f]  ;;  %v272_v11 = vld [vmem:[%s350_s3 + $0x8] sm:$0xff]  }
   0x5   :  { %v22_v10 = vpack.c.bf16 %v21_v9, %v21_v9  ;;  %255 = vmatpush3.bf16.msra.mxu1 %v272_v11  ;;  %v273_v12 = vld [vmem:[%s350_s3] sm:$0xff]  }
   0x6   :  { %256 = vmatprep.subr.bf16.mxu1 %v274_v0  ;;  %v209_v13 = vld [vmem:[%s351_s2] ss:$0 sm:$0xff] }
   0x7   :  { %237 = vmatpush3.bf16.msra.mxu0 %v265_v2  ;;  %v218_v21 = vld [vmem:[%s352_s4] ss:$0 sm:$0xff] }
   0x8   :  { %238 = vmatprep.subr.bf16.mxu0 %v274_v0 }
   0x9   :  { %257 = vmatpush3.bf16.msra.mxu1 %v273_v12 }
   0xb   :  { %239 = vmatpush3.bf16.msra.mxu0 %v266_v3 }
   0xc   :  { %240 = vmatprep.subr.bf16.mxu0 %v274_v0 }
   0xf   :  { %241 = vmatpush3.bf16.msra.mxu0 %v267_v4 }
  0x10   :  { %242 = vmatprep.subr.bf16.mxu0 %v274_v0 }
  0x13   :  { %243 = vmatpush3.bf16.msra.mxu0 %v268_v5 }
  0x14   :  { %244 = vmatprep.subr.bf16.mxu0 %v274_v0 }
  0x17   :  { %245 = vmatpush3.bf16.msra.mxu0 %v269_v6 }
  0x18   :  { %246 = vmatprep.subr.bf16.mxu0 %v274_v0 }
  0x1b   :  { %247 = vmatpush3.bf16.msra.mxu0 %v270_v7 }
  0x1c   :  { %248 = vmatprep.subr.bf16.mxu0 %v274_v0 }
  0x1f   :  { %249 = vmatpush3.bf16.msra.mxu0 %v271_v8 }
  0x22   :  { %251 = vmatmul.mubr.bf16.vlgmr.msra.gmra.mxu0 %v22_v10 }
  0xe2   :  { %v128_v14 = vpop.f32.mrf.mxu0 }
  0xe3   :  { %v129_v15 = vadd.f32 %v209_v13, %v128_v14 }
  0xe4   :  { %v252_v16 = vpop.f32.mrf.mxu0 }
  0xe5   :  { %v134_v17 = vmax.f32 %v129_v15, 0.0 }
  0xe6   :  { %v131_v18 = vpop.f32.mrf.mxu0 }
  0xe7   :  { %v135_v19 = vpack.c.bf16 %v134_v17, %v134_v17 }
  0xe8   :  { %v253_v20 = vpop.f32.mrf.mxu0 }
  0xe9   :  { %259 = vmatmul.mubr.msk.bf16.vlgmr.msra.gmra.mxu1 %vm159_vm1, %v135_v19 }
 0x1a9   :  { %v197_v22 = vpop.f32.mrf.mxu1 }
 0x1aa   :  { %v198_v23 = vadd.f32 %v218_v21, %v197_v22 }
 0x1ab   :  { %v260_v24 = vpop.f32.mrf.mxu1 }
 0x1ac   :  { %204 = vst.msk [vmem:[%s353_s5] sm:$0x3f] %vm203_vm2, %v198_v23 }
 0x1ad   :  { %v200_v25 = vpop.f32.mrf.mxu1 }
 0x1af   :  { %v261_v26 = vpop.f32.mrf.mxu1 }

// kernel: relation_trans_token_forward.5
= control target key start
LH: loop header
LB: loop body
LE: loop exit
PB: predicated region body
PF: predicated region fallthrough
CT: control target
= control target key end

     0   :  { %v39_v0 = vlaneseq  ;;  %v1085_v1 = vmov 0.0   ;;  %v1086_v3 = vmov 1966171168   ;;  %vm1087_vm0 = vmmov 0   ;;  %s1269_s2 = inlined_call_operand.vmem [shape: bf16[32,32], index: 2, kind: input, shape index: {}]   ;;  %s1270_s1 = inlined_call_operand.vmem [shape: bf16[32,32], index: 1, kind: input, shape index: {}]   ;;  %s1271_s0 = inlined_call_operand.vmem [shape: f32[2,3,32], index: 0, kind: input, shape index: {}]   ;;  %s1272_s4 = inlined_call_operand.vmem [shape: bf16[32,32], index: 4, kind: input, shape index: {}]   ;;  %s1273_s3 = inlined_call_operand.vmem [shape: f32[1,32], index: 3, kind: input, shape index: {}, may-alias: {3,5}]   ;;  %s1274_s5 = inlined_call_operand.vmem [shape: f32[1,32], index: 5, kind: input, shape index: {}, may-alias: {3,5}]   ;;  %s1275_s6 = inlined_call_operand.vmem [shape: f32[2,9,32], index: 6, kind: output, shape index: {}]  }
   0x1   :  { %1060 = vmatprep.subr.bf16.mxu1 %v1085_v1  ;;  %v1079_v2 = vld [vmem:[%s1269_s2 + $0x8] sm:$0xff]   ;;  %1052 = vmatprep.subr.bf16.mxu0 %v1085_v1  ;;  %v37_v4 = vunpack.c.l.s4 %v1086_v3  ;;  %v1081_v7 = vld [vmem:[%s1269_s2] sm:$0xff]   ;;  %vm132_vm1 = vcmask 261120   ;;  %vm1018_vm2 = vcmask 253952  }
   0x2   :  { %v1080_v5 = vld [vmem:[%s1270_s1 + $0x8] sm:$0xff]   ;;  %1064 = vmatprep.mubr.msk.bf16.mxu1 %vm1087_vm0, %v1085_v1  ;;  %v1129_v6 = vshrl.u32 %v39_v0, 7  ;;  %1056 = vmatprep.mubr.msk.bf16.mxu0 %vm1087_vm0, %v1085_v1  ;;  %v1082_v9 = vld [vmem:[%s1270_s1] sm:$0xff]  }
   0x3   :  { %1061 = vmatpush3.bf16.msra.mxu1 %v1079_v2  ;;  %v38_v8 = vunpack.c.0.s8 %v37_v4  ;;  %1053 = vmatpush3.bf16.msra.mxu0 %v1080_v5  ;;  %v1026_v10 = vld.sshfl [vmem:[%s1271_s0] sm:$0x13 pattern:$0x75316420]  ;;  %v1083_v32 = vld [vmem:[%s1272_s4 + $0x8] sm:$0xff]  }
   0x4   :  { %1062 = vmatprep.subr.bf16.mxu1 %v1085_v1  ;;  %1054 = vmatprep.subr.bf16.mxu0 %v1085_v1  ;;  %v1027_v12 = vld.sshfl [vmem:[%s1271_s0 + $0x4] sm:$0x13 pattern:$0x75316420]  ;;  %v35_v13 = vcombine.high %v1026_v10, %v1026_v10  ;;  %v1031_v34 = vld [vmem:[%s1273_s3] ss:$0 sm:$0xff] }
   0x5   :  { %v1141_v11 = vsub.s32 %v38_v8, %v1129_v6  ;;  %v58_v15 = vcombine.high %v1027_v12, %v1027_v12  ;;  %v1084_v33 = vld [vmem:[%s1272_s4] sm:$0xff]   ;;  %v337_v1 = vsub.s32 0, %v1129_v6 }
   0x7   :  { %1063 = vmatpush3.bf16.msra.mxu1 %v1081_v7  ;;  %v42_v14 = vrot.slane %v1026_v10, %v1141_v11  ;;  %v65_v16 = vrot.slane %v1027_v12, %v1141_v11  ;;  %1055 = vmatpush3.bf16.msra.mxu0 %v1082_v9  ;;  %v49_v17 = vrot.slane %v35_v13, %v1141_v11 }
   0x8   :  { %v72_v19 = vrot.slane %v58_v15, %v1141_v11  ;;  %1068 = vmatprep.subr.bf16.mxu0 %v1083_v32 }
   0x9   :  { %v50_v18 = vcombine.high %v42_v14, %v42_v14  ;;  %v73_v20 = vcombine.high %v65_v16, %v65_v16  ;;  %v74_v21 = vcombine.low %v42_v14, %v49_v17 }
   0xb   :  { %v75_v22 = vcombine.low %v50_v18, %v65_v16  ;;  %v76_v23 = vcombine.low %v72_v19, %v73_v20  ;;  %v83_v24 = vrot.slane %v74_v21, %v1141_v11 }
   0xd   :  { %v90_v25 = vrot.slane %v75_v22, %v1141_v11  ;;  %v97_v26 = vrot.slane %v76_v23, %v1141_v11 }
   0xf   :  { %v98_v27 = vcombine.low %v83_v24, %v90_v25  ;;  %v112_v28 = vrot.slane %v97_v26, %v1141_v11 }
  0x11   :  { %v105_v29 = vrot.slane %v98_v27, %v1141_v11 }
  0x13   :  { %v113_v30 = vcombine.low %v105_v29, %v112_v28 }
  0x15   :  { %v115_v31 = vpack.c.bf16 %v113_v30, %v113_v30 }
  0x17   :  { %1065 = vmatmul.mubr.msk.bf16.vlgmr.msra.gmra.mxu1 %vm132_vm1, %v115_v31  ;;  %1057 = vmatmul.mubr.msk.bf16.vlgmr.msra.gmra.mxu0 %vm132_vm1, %v115_v31 }
  0x18   :  { %1069 = vmatpush3.bf16.msra.mxu0 %v1083_v32 }
  0x19   :  { %1070 = vmatprep.subr.bf16.mxu0 %v1084_v33 }
  0x1c   :  { %1071 = vmatpush3.bf16.msra.mxu0 %v1084_v33 }
  0xd7   :  { %v233_v35 = vpop.f32.mrf.mxu1  ;;  %v170_v36 = vpop.f32.mrf.mxu0 }
  0xd8   :  { %v234_v37 = vadd.f32 %v1031_v34, %v233_v35  ;;  %v240_v38 = vcombine.high %v170_v36, %v170_v36  ;;  %v247_v39 = vrot.slane %v170_v36, %v1141_v11 }
  0xd9   :  { %v1066_v40 = vpop.f32.mrf.mxu1  ;;  %v1058_v41 = vpop.f32.mrf.mxu0 }
  0xda   :  { %v288_v42 = vcombine.high %v234_v37, %v234_v37  ;;  %v295_v43 = vrot.slane %v234_v37, %v1141_v11  ;;  %v254_v44 = vrot.slane %v240_v38, %v1141_v11  ;;  %v255_v45 = vcombine.high %v247_v39, %v247_v39 }
  0xdb   :  { %v263_v46 = vrot.slane %v247_v39, %v1141_v11  ;;  %v236_v47 = vpop.f32.mrf.mxu1  ;;  %v173_v48 = vpop.f32.mrf.mxu0 }
  0xdc   :  { %v302_v49 = vrot.slane %v288_v42, %v1141_v11  ;;  %v303_v50 = vcombine.high %v295_v43, %v295_v43  ;;  %v311_v51 = vrot.slane %v295_v43, %v1141_v11  ;;  %v256_v52 = vcombine.high %v254_v44, %v254_v44 }
  0xdd   :  { %v1067_v53 = vpop.f32.mrf.mxu1  ;;  %v1059_v54 = vpop.f32.mrf.mxu0  ;;  %v277_v58 = vrot.slane %v255_v45, %v1141_v11  ;;  %v285_v59 = vcombine.high %v263_v46, %v263_v46  ;;  %v270_v7 = vrot.slane %v254_v44, %v1141_v11  ;;  %v338_v14 = vrot.slane %v263_v46, %v337_v1 }
  0xde   :  { %v304_v55 = vcombine.high %v302_v49, %v302_v49  ;;  %v325_v56 = vrot.slane %v303_v50, %v1141_v11  ;;  %v333_v57 = vcombine.high %v311_v51, %v311_v51  ;;  %v318_v60 = vrot.slane %v302_v49, %v1141_v11 }
  0xdf   :  { %v284_v0 = vrot.slane %v256_v52, %v1141_v11  ;;  %v286_v5 = vcombine.high %v277_v58, %v277_v58  ;;  %v342_v8 = vrot.slane %v277_v58, %v337_v1  ;;  %v346_v13 = vrot.slane %v285_v59, %v337_v1 }
  0xe0   :  { %v332_v61 = vrot.slane %v304_v55, %v1141_v11  ;;  %v334_v62 = vcombine.high %v325_v56, %v325_v56  ;;  %v365_v63 = vcombine.low %v311_v51, %v325_v56  ;;  %v379_v3 = vrot.slane %v333_v57, %v1141_v11 }
  0xe1   :  { %v350_v16 = vrot.slane %v286_v5, %v337_v1  ;;  %v358_v17 = vrot.slane %v284_v0, %v337_v1  ;;  %v354_v18 = vrot.slane %v270_v7, %v337_v1 }
  0xe2   :  { %v372_v2 = vrot.slane %v365_v63, %v1141_v11  ;;  %v388_v4 = vcombine.low %v334_v62, %v318_v60  ;;  %v402_v12 = vrot.slane %v332_v61, %v1141_v11 }
  0xe4   :  { %v380_v9 = vcombine.low %v372_v2, %v379_v3  ;;  %v395_v10 = vrot.slane %v388_v4, %v1141_v11 }
  0xe6   :  { %v403_v15 = vcombine.low %v395_v10, %v402_v12  ;;  %v387_v6 = vrot.slane %v380_v9, %v1141_v11 }
  0xe8   :  { %v410_v19 = vrot.slane %v403_v15, %v1141_v11  ;;  %v413_v20 = vadd.f32 %v387_v6, %v338_v14  ;;  %v414_v21 = vadd.f32 %v387_v6, %v342_v8  ;;  %v415_v22 = vadd.f32 %v387_v6, %v346_v13 }
  0xea   :  { %v416_v23 = vadd.f32 %v410_v19, %v350_v16  ;;  %v417_v24 = vadd.f32 %v410_v19, %v354_v18  ;;  %v418_v25 = vadd.f32 %v410_v19, %v358_v17  ;;  %v419_v26 = vmax.f32 %v413_v20, 0.0 }
  0xeb   :  { %v420_v27 = vmax.f32 %v414_v21, 0.0  ;;  %v421_v28 = vmax.f32 %v415_v22, 0.0 }
  0xec   :  { %v422_v29 = vmax.f32 %v416_v23, 0.0  ;;  %v423_v30 = vmax.f32 %v417_v24, 0.0  ;;  %v437_v31 = vrot.slane %v419_v26, %v1141_v11  ;;  %v424_v32 = vmax.f32 %v418_v25, 0.0 }
  0xed   :  { %v460_v33 = vrot.slane %v420_v27, %v1141_v11  ;;  %v483_v34 = vrot.slane %v421_v28, %v1141_v11 }
  0xee   :  { %v438_v35 = vcombine.high %v437_v31, %v437_v31  ;;  %v445_v36 = vrot.slane %v437_v31, %v1141_v11  ;;  %v506_v37 = vrot.slane %v422_v29, %v1141_v11  ;;  %v529_v38 = vrot.slane %v423_v30, %v1141_v11  ;;  %v1035_v30 = vld [vmem:[%s1274_s5] ss:$0 sm:$0xff] }
  0xef   :  { %v461_v39 = vcombine.high %v460_v33, %v460_v33  ;;  %v468_v40 = vrot.slane %v460_v33, %v1141_v11  ;;  %v484_v41 = vcombine.high %v483_v34, %v483_v34  ;;  %v491_v42 = vrot.slane %v483_v34, %v1141_v11 }
  0xf0   :  { %v452_v43 = vrot.slane %v438_v35, %v1141_v11  ;;  %v453_v44 = vcombine.high %v445_v36, %v445_v36  ;;  %v507_v45 = vcombine.high %v506_v37, %v506_v37  ;;  %v514_v46 = vrot.slane %v506_v37, %v1141_v11 }
  0xf1   :  { %v475_v47 = vrot.slane %v461_v39, %v1141_v11  ;;  %v476_v48 = vcombine.high %v468_v40, %v468_v40  ;;  %v498_v49 = vrot.slane %v484_v41, %v1141_v11  ;;  %v499_v50 = vcombine.high %v491_v42, %v491_v42 }
  0xf2   :  { %v521_v51 = vrot.slane %v507_v45, %v1141_v11  ;;  %v522_v52 = vcombine.high %v514_v46, %v514_v46  ;;  %v530_v53 = vcombine.high %v529_v38, %v529_v38  ;;  %v537_v54 = vrot.slane %v529_v38, %v1141_v11 }
  0xf3   :  { %v552_v55 = vrot.slane %v424_v32, %v1141_v11  ;;  %v569_v56 = vcombine.low %v445_v36, %v452_v43  ;;  %v570_v57 = vcombine.low %v453_v44, %v468_v40  ;;  %v572_v58 = vcombine.low %v491_v42, %v498_v49 }
  0xf4   :  { %v544_v59 = vrot.slane %v530_v53, %v1141_v11  ;;  %v545_v60 = vcombine.high %v537_v54, %v537_v54  ;;  %v571_v61 = vcombine.low %v475_v47, %v476_v48  ;;  %v618_v62 = vcombine.low %v499_v50, %v514_v46 }
  0xf5   :  { %v553_v63 = vcombine.high %v552_v55, %v552_v55  ;;  %v560_v0 = vrot.slane %v552_v55, %v1141_v11  ;;  %v579_v1 = vrot.slane %v569_v56, %v1141_v11  ;;  %v586_v2 = vrot.slane %v570_v57, %v1141_v11 }
  0xf6   :  { %v620_v3 = vcombine.low %v537_v54, %v544_v59  ;;  %v593_v4 = vrot.slane %v571_v61, %v1141_v11  ;;  %v600_v5 = vrot.slane %v572_v58, %v1141_v11  ;;  %v619_v7 = vcombine.low %v521_v51, %v522_v52 }
  0xf7   :  { %v567_v8 = vrot.slane %v553_v63, %v1141_v11  ;;  %v568_v9 = vcombine.high %v560_v0, %v560_v0  ;;  %v601_v10 = vcombine.low %v579_v1, %v586_v2  ;;  %v621_v12 = vcombine.low %v545_v60, %v560_v0 }
  0xf8   :  { %v602_v13 = vcombine.low %v593_v4, %v600_v5  ;;  %v628_v14 = vrot.slane %v618_v62, %v1141_v11  ;;  %v635_v15 = vrot.slane %v619_v7, %v1141_v11  ;;  %v642_v16 = vrot.slane %v620_v3, %v1141_v11 }
  0xf9   :  { %v649_v17 = vrot.slane %v621_v12, %v1141_v11  ;;  %v667_v6 = vcombine.low %v567_v8, %v568_v9  ;;  %v609_v19 = vrot.slane %v601_v10, %v1141_v11 }
  0xfa   :  { %v650_v18 = vcombine.low %v628_v14, %v635_v15  ;;  %v616_v20 = vrot.slane %v602_v13, %v1141_v11 }
  0xfb   :  { %v651_v21 = vcombine.low %v642_v16, %v649_v17  ;;  %v674_v22 = vrot.slane %v667_v6, %v1141_v11 }
  0xfc   :  { %v658_v23 = vrot.slane %v650_v18, %v1141_v11  ;;  %v617_v26 = vcombine.low %v609_v19, %v616_v20 }
  0xfd   :  { %v665_v24 = vrot.slane %v651_v21, %v1141_v11  ;;  %v681_v25 = vrot.slane %v674_v22, %v1141_v11 }
  0xff   :  { %v666_v27 = vcombine.low %v658_v23, %v665_v24  ;;  %v686_v29 = vpack.c.bf16 %v681_v25, %v681_v25 }
 0x101   :  { %v685_v28 = vpack.c.bf16 %v666_v27, %v617_v26 }
 0x103   :  { %1072 = vmatprep.mubr.msk.bf16.mxu0 %vm132_vm1, %v685_v28 }
 0x104   :  { %1073 = vmatmul.mubr.msk.bf16.vlgmr.msra.gmra.mxu0 %vm132_vm1, %v686_v29 }
 0x1c4   :  { %v1074_v31 = vpop.f32.mrf.mxu0 }
 0x1c5   :  { %v759_v32 = vadd.f32 %v1074_v31, %v1035_v30 }
 0x1c6   :  { %v750_v33 = vpop.f32.mrf.mxu0 }
 0x1c7   :  { %v871_v34 = vrot.slane %v759_v32, %v1141_v11  ;;  %v751_v35 = vadd.f32 %v1035_v30, %v750_v33 }
 0x1c8   :  { %v1075_v36 = vpop.f32.mrf.mxu0 }
 0x1c9   :  { %v872_v37 = vcombine.high %v871_v34, %v871_v34  ;;  %v767_v38 = vcombine.high %v751_v35, %v751_v35  ;;  %v774_v39 = vrot.slane %v751_v35, %v1141_v11  ;;  %v879_v15 = vrot.slane %v871_v34, %v1141_v11 }
 0x1ca   :  { %v753_v40 = vpop.f32.mrf.mxu0 }
 0x1cb   :  { %v886_v41 = vrot.slane %v872_v37, %v1141_v11  ;;  %v781_v42 = vrot.slane %v767_v38, %v1141_v11  ;;  %v782_v43 = vcombine.high %v774_v39, %v774_v39  ;;  %v754_v44 = vadd.f32 %v1035_v30, %v753_v40 }
 0x1cc   :  { %v790_v47 = vrot.slane %v774_v39, %v1141_v11 }
 0x1cd   :  { %v1005_v45 = vrot.slane %v886_v41, %v1141_v11  ;;  %v783_v46 = vcombine.high %v781_v42, %v781_v42  ;;  %v804_v48 = vrot.slane %v782_v43, %v1141_v11  ;;  %v797_v49 = vrot.slane %v781_v42, %v1141_v11 }
 0x1ce   :  { %v816_v50 = vcombine.high %v754_v44, %v754_v44  ;;  %v823_v51 = vrot.slane %v754_v44, %v1141_v11 }
 0x1cf   :  { %v1012_v52 = vrot.slane %v1005_v45, %v1141_v11  ;;  %v811_v53 = vrot.slane %v783_v46, %v1141_v11  ;;  %v887_v54 = vcombine.low %v790_v47, %v804_v48  ;;  %v1040_v55 = vcombine.high %v790_v47, %v804_v48 }
 0x1d0   :  { %v830_v56 = vrot.slane %v816_v50, %v1141_v11  ;;  %v831_v57 = vcombine.high %v823_v51, %v823_v51  ;;  %v839_v58 = vrot.slane %v823_v51, %v1141_v11 }
 0x1d1   :  { %1021 = vst.msk [vmem:[%s1275_s6 + $0x18] sm:$0x1] %vm1018_vm2, %v1012_v52  ;;  %v889_v59 = vcombine.low %v797_v49, %v811_v53  ;;  %v1041_v60 = vcombine.high %v797_v49, %v811_v53  ;;  %v897_v61 = vrot.slane %v887_v54, %v1141_v11  ;;  %v904_v62 = vrot.slane %v1040_v55, %v1141_v11 }
 0x1d2   :  { %v832_v63 = vcombine.high %v830_v56, %v830_v56  ;;  %v846_v0 = vrot.slane %v830_v56, %v1141_v11  ;;  %v853_v1 = vrot.slane %v831_v57, %v1141_v11  ;;  %v861_v2 = vcombine.high %v839_v58, %v839_v58 }
 0x1d3   :  { %v911_v3 = vrot.slane %v889_v59, %v1141_v11  ;;  %v918_v4 = vrot.slane %v1041_v60, %v1141_v11  ;;  %v919_v5 = vcombine.low %v897_v61, %v904_v62  ;;  %v942_v7 = vrot.slane %v839_v58, %v1141_v11 }
 0x1d4   :  { %v860_v8 = vrot.slane %v832_v63, %v1141_v11  ;;  %v862_v9 = vcombine.high %v846_v0, %v846_v0  ;;  %v863_v10 = vcombine.high %v853_v1, %v853_v1  ;;  %v950_v12 = vcombine.low %v853_v1, %v861_v2 }
 0x1d5   :  { %v920_v13 = vcombine.low %v911_v3, %v918_v4  ;;  %v949_v14 = vrot.slane %v942_v7, %v1141_v11  ;;  %v927_v18 = vrot.slane %v919_v5, %v1141_v11 }
 0x1d6   :  { %v864_v16 = vcombine.high %v860_v8, %v860_v8  ;;  %v951_v17 = vcombine.low %v863_v10, %v846_v0  ;;  %v952_v6 = vcombine.low %v860_v8, %v862_v9  ;;  %v960_v21 = vrot.slane %v950_v12, %v1141_v11 }
 0x1d7   :  { %v934_v19 = vrot.slane %v920_v13, %v1141_v11  ;;  %1019 = vst.msk [vmem:[%s1275_s6 + $0x8] sm:$0x1] %vm1018_vm2, %v949_v14 }
 0x1d8   :  { %v953_v20 = vcombine.low %v864_v16, %v879_v15  ;;  %v967_v22 = vrot.slane %v951_v17, %v1141_v11  ;;  %v974_v24 = vrot.slane %v952_v6, %v1141_v11 }
 0x1d9   :  { %v935_v23 = vcombine.low %v927_v18, %v934_v19 }
 0x1da   :  { %v981_v25 = vrot.slane %v953_v20, %v1141_v11  ;;  %v982_v26 = vcombine.low %v960_v21, %v967_v22 }
 0x1db   :  { %1017 = vst.msk [vmem:[%s1275_s6] sm:$0xff] %vm132_vm1, %v935_v23 }
 0x1dc   :  { %v983_v27 = vcombine.low %v974_v24, %v981_v25  ;;  %v990_v28 = vrot.slane %v982_v26, %v1141_v11 }
 0x1de   :  { %v997_v29 = vrot.slane %v983_v27, %v1141_v11 }
 0x1e0   :  { %v998_v30 = vcombine.low %v990_v28, %v997_v29 }
 0x1e2   :  { %1020 = vst.msk [vmem:[%s1275_s6 + $0x10] sm:$0xff] %vm132_vm1, %v998_v30 }

// kernel: relation_trans_token_forward.3
= control target key start
LH: loop header
LB: loop body
LE: loop exit
PB: predicated region body
PF: predicated region fallthrough
CT: control target
= control target key end

     0   :  { %s3282_s25 = smov 0   ;;  %s3284_s26 = smov 0   ;;  %s3860_s0 = inlined_call_operand.vmem [shape: f32[8,4,32], index: 0, kind: input, shape index: {}]   ;;  %s3861_s1 = inlined_call_operand.vmem [shape: bf16[2,32,96], index: 1, kind: input, shape index: {}]   ;;  %s3862_s2 = inlined_call_operand.vmem [shape: f32[2,1,96], index: 2, kind: input, shape index: {}]   ;;  %s3863_s3 = inlined_call_operand.vmem [shape: bf16[2,32,32], index: 3, kind: input, shape index: {}]   ;;  %s3864_s4 = inlined_call_operand.vmem [shape: f32[2,1,32], index: 4, kind: input, shape index: {}, may-alias: {4,6,10,12}]   ;;  %s3865_s5 = inlined_call_operand.vmem [shape: f32[2,1,32], index: 5, kind: input, shape index: {}, may-alias: {5,11}]   ;;  %s3866_s6 = inlined_call_operand.vmem [shape: f32[2,1,32], index: 6, kind: input, shape index: {}, may-alias: {4,6,10,12}]   ;;  %s3867_s7 = inlined_call_operand.vmem [shape: bf16[2,32,64], index: 7, kind: input, shape index: {}]   ;;  %s3868_s8 = inlined_call_operand.vmem [shape: f32[2,1,64], index: 8, kind: input, shape index: {}]   ;;  %s3869_s9 = inlined_call_operand.vmem [shape: bf16[2,64,32], index: 9, kind: input, shape index: {}]   ;;  %s3870_s10 = inlined_call_operand.vmem [shape: f32[2,1,32], index: 10, kind: input, shape index: {}, may-alias: {4,6,10,12}]   ;;  %s3871_s11 = inlined_call_operand.vmem [shape: f32[2,1,32], index: 11, kind: input, shape index: {}, may-alias: {5,11}]   ;;  %s3872_s12 = inlined_call_operand.vmem [shape: f32[2,1,32], index: 12, kind: input, shape index: {}, may-alias: {4,6,10,12}]   ;;  %s3873_s13 = inlined_call_operand.vmem [shape: f32[8,4,32], index: 13, kind: output, shape index: {}]  }
   0x1   :  { %3879 = sst [smem:[#allocation6_spill]] %s3861_s1  ;;  %s3286_s27 = smov 0  }
   0x2   :  { %3880 = sst [smem:[#allocation7_spill]] %s3863_s3 }
   0x3   :  { %3881 = sst [smem:[#allocation8_spill]] %s3873_s13 }
   0x4 LB: > { %3882 = sst [smem:[#allocation2_spill]] %s3199_s26  ;;  %s32_s28 = sadd.s32 1, %s3199_s26  ;;  %s3203_s27 = sphi %s3286_s27, %s23_s27   ;;  %s3199_s26 = sphi %s3284_s26, %s3898_s26   ;;  %s3195_s25 = sphi %s3282_s25, %s3897_s25  }
   0x5   : > { %3883 = sst [smem:[#allocation3_spill]] %s3203_s27  ;;  %p2842_p0 = scmp.ge.s32.totalorder %s3203_s27, 1 }
   0x6   : > { %p33_p1 = scmp.ge.s32.totalorder %s32_s28, 2  ;;  %p504_p2 = scmp.lt.s32.totalorder %s3203_s27, 3 }
   0x8   : > { %s3900_s28 = smov (%p33_p1, %s32_s28), 0  ;;  %p505_p3 = pnand %p2842_p0, %p504_p2 }
   0x9   : > { %3884 = sst [smem:[#allocation4_spill]] %s3900_s28 }
   0xa   : > { %508 = sbr.rel (%p505_p3) target bundleno = 2417 (0x971), region = 72 }
   0xf   : > { %p598_p4 = scmp.lt.s32.totalorder %s3195_s25, 1  ;;  %s3885_s1 = sld [smem:[#allocation6_spill]] }
  0x10   : > { %s3886_s3 = sld [smem:[#allocation7_spill]]  ;;  %p2851_p5 = scmp.ne.s32.totalorder %s3195_s25, 0 }
  0x11   : > { %s3300_s29 = scalar_select %p598_p4, %s3195_s25, 1 }
  0x12   : > { %s3888_s27 = sld [smem:[#allocation8_spill]] (!%p2851_p5) }
  0x13   : > { %s2902_s30 = sshll.u32 %s3300_s29, 4  ;;  %s635_s14 = scalar_lea.vmem %s3870_s10, %s3300_s29 }
  0x14   : > { %s638_s17 = scalar_lea.vmem %s3871_s11, %s3300_s29  ;;  %652 = sbr.rel (%p2851_p5) target bundleno = 31 (0x1f), region = 76 }
  0x15   : > { %s3310_s19 = scalar_lea.vmem %s3885_s1, %s2902_s30  ;;  %s3332_s1 = scalar_lea.vmem %s3867_s7, %s2902_s30 }
  0x16   : > { %s3315_s22 = scalar_lea.vmem %s3886_s3, %s2902_s30  ;;  %s627_s3 = scalar_lea.vmem %s3868_s8, %s3300_s29 }
  0x17   : > { %3887 = sst [smem:[#allocation5_spill]] %s3315_s22  ;;  %s2905_s22 = sshll.u32 %s3300_s29, 5 }
  0x18   : > { %s3342_s28 = scalar_lea.vmem %s3869_s9, %s2905_s22 }
  0x19   : > { %v653_v0 = vld [vmem:[%s3860_s0] sm:$0xf]  ;;  %vm661_vm0 = vcmask 257024   ;;  %v654_v1 = vld [vmem:[%s3860_s0 + $0x4] sm:$0xf] }
  0x1a   : > { %662 = vst.msk [vmem:[%s3888_s27] sm:$0xf] %vm661_vm0, %v653_v0  ;;  %663 = vst.msk [vmem:[%s3888_s27 + $0x4] sm:$0xf] %vm661_vm0, %v654_v1  ;;  %v655_v2 = vld [vmem:[%s3860_s0 + $0x8] sm:$0xf] }
  0x1b   : > { %v656_v3 = vld [vmem:[%s3860_s0 + $0xc] sm:$0xf]  ;;  %v657_v4 = vld [vmem:[%s3860_s0 + $0x10] sm:$0xf]  ;;  %664 = vst.msk [vmem:[%s3888_s27 + $0x8] sm:$0xf] %vm661_vm0, %v655_v2 }
  0x1c   : > { %665 = vst.msk [vmem:[%s3888_s27 + $0xc] sm:$0xf] %vm661_vm0, %v656_v3  ;;  %666 = vst.msk [vmem:[%s3888_s27 + $0x10] sm:$0xf] %vm661_vm0, %v657_v4  ;;  %v658_v5 = vld [vmem:[%s3860_s0 + $0x14] sm:$0xf] }
  0x1d   : > { %v659_v6 = vld [vmem:[%s3860_s0 + $0x18] sm:$0xf]  ;;  %v660_v7 = vld [vmem:[%s3860_s0 + $0x1c] sm:$0xf]  ;;  %667 = vst.msk [vmem:[%s3888_s27 + $0x14] sm:$0xf] %vm661_vm0, %v658_v5 }
  0x1e   : > { %668 = vst.msk [vmem:[%s3888_s27 + $0x18] sm:$0xf] %vm661_vm0, %v659_v6  ;;  %669 = vst.msk [vmem:[%s3888_s27 + $0x1c] sm:$0xf] %vm661_vm0, %v660_v7 }
  0x1f PF: > { %v3119_v8 = vld [vmem:[%s3310_s19 + $0x8] sm:$0xff]   ;;  %v3120_v9 = vld [vmem:[%s3310_s19] sm:$0xff]   ;;  %vm719_vm1 = vcmask 261120   ;;  %s3889_s18 = sld [smem:[#allocation8_spill]]  ;;  %s3890_s22 = scalar_lea.vmem %s3862_s2, %s3300_s29  ;;  %v3205_v26 = vmov 1983009808   ;;  %v787_v28 = vlaneseq }
  0x20   : > { %2956 = vmatprep.subr.bf16.mxu0 %v3119_v8  ;;  %v2852_v25 = vld [vmem:[%s3890_s22] ss:$0 sm:$0xff]  ;;  %v785_v27 = vunpack.c.l.s4 %v3205_v26  ;;  %v3206_v32 = vmov 0.0   ;;  %vm3207_vm2 = vmmov 0   ;;  %s3208_s27 = smov 96   ;;  %s3209_s19 = smov 64  }
  0x21   : > { %2957 = vmatpush3.bf16.msra.mxu0 %v3119_v8  ;;  %2964 = vmatprep.subr.bf16.mxu1 %v3206_v32  ;;  %v3463_v35 = vshrl.u32 %v787_v28, 7  ;;  %vm1398_vm3 = vcmask 1041408   ;;  %vm1295_vm4 = vcmask 27648   ;;  %vm1394_vm5 = vcmask 31744   ;;  %s3891_s23 = sld [smem:[#allocation5_spill]]  ;;  %s3892_s16 = scalar_lea.vmem %s3864_s4, %s3300_s29 }
  0x22   : > { %2958 = vmatprep.subr.bf16.mxu0 %v3120_v9  ;;  %v786_v34 = vunpack.c.0.s8 %v785_v27  ;;  %2966 = vmatprep.mubr.msk.bf16.mxu1 %vm3207_vm2, %v3206_v32  ;;  %s3893_s30 = scalar_lea.vmem %s3865_s5, %s3300_s29  ;;  %s3894_s13 = scalar_lea.vmem %s3866_s6, %s3300_s29  ;;  %vm2302_vm6 = vcmask 523264   ;;  %vm2644_vm7 = vcmask 257024  }
  0x23   : > { %s3895_s24 = scalar_lea.vmem %s3872_s12, %s3300_s29 }
  0x24   : > { %v789_v42 = vsub.s32 %v786_v34, %v3463_v35 }
  0x25   : > { %v3409_v10 = vld [vmem:[%s3889_s18] sm:$0xf]  ;;  %v3414_v11 = vld [vmem:[%s3889_s18 + $0x4] sm:$0xf]  ;;  %v3419_v12 = vld [vmem:[%s3889_s18 + $0x8] sm:$0xf]  ;;  %2959 = vmatpush3.bf16.msra.mxu0 %v3120_v9 }
  0x26   : > { %v3424_v13 = vld [vmem:[%s3889_s18 + $0xc] sm:$0xf]  ;;  %v686_v14 = vcombine.low %v3409_v10, %v3414_v11  ;;  %v3431_v15 = vld [vmem:[%s3889_s18 + $0x10] sm:$0xf]  ;;  %v3436_v16 = vld [vmem:[%s3889_s18 + $0x14] sm:$0xf]  ;;  %2970 = vmatprep.subr.bf16.mxu0 %v3206_v32 }
  0x27   : > { %v687_v17 = vcombine.low %v3419_v12, %v3424_v13  ;;  %v3443_v18 = vld [vmem:[%s3889_s18 + $0x18] sm:$0xf]  ;;  %v3448_v19 = vld [vmem:[%s3889_s18 + $0x1c] sm:$0xf]  ;;  %v688_v20 = vcombine.low %v3431_v15, %v3436_v16 }
  0x28   : > { %v689_v21 = vcombine.low %v3443_v18, %v3448_v19 }
  0x29   : > { %v694_v22 = vpack.c.bf16 %v687_v17, %v686_v14 }
  0x2a   : > { %v695_v23 = vpack.c.bf16 %v689_v21, %v688_v20 }
  0x2b   : > { %2960 = vmatprep.mubr.msk.bf16.mxu0 %vm719_vm1, %v694_v22 }
  0x2c   : > { %2961 = vmatmul.mubr.msk.bf16.vlgmr.msra.gmra.mxu0 %vm719_vm1, %v695_v23 }
  0x2d   : > { %2972 = vmatprep.mubr.msk.bf16.mxu0 %vm3207_vm2, %v3206_v32 }
  0xec   : > { %v2962_v24 = vpop.f32.mrf.mxu0 }
  0xed   : > { %v769_v30 = vadd.f32 %v2962_v24, %v2852_v25 }
  0xee   : > { %v760_v29 = vpop.f32.mrf.mxu0 }
  0xef   : > { %v761_v36 = vadd.f32 %v2852_v25, %v760_v29  ;;  %v777_v38 = vmul.f32 0.17677669, %v769_v30 }
  0xf0   : > { %v2963_v31 = vpop.f32.mrf.mxu0 }
  0xf1   : > { %v772_v33 = vadd.f32 %v2963_v31, %v2852_v25  ;;  %v775_v45 = vmul.f32 0.17677669, %v761_v36 }
  0xf2   : > { %v763_v37 = vpop.f32.mrf.mxu0 }
  0xf3   : > { %v778_v39 = vmul.f32 0.17677669, %v772_v33  ;;  %v764_v40 = vadd.f32 %v2852_v25, %v763_v37  ;;  %v818_v44 = vpack.c.bf16 %v772_v33, %v769_v30  ;;  %v2860_v55 = vpack.c.bf16 %v772_v33, %v772_v33 }
  0xf5   : > { %v780_v41 = vpack.c.bf16 %v778_v39, %v777_v38  ;;  %v2858_v43 = vpack.c.bf16 %v778_v39, %v778_v39  ;;  %v776_v46 = vmul.f32 0.17677669, %v764_v40  ;;  %v817_v47 = vpack.c.bf16 %v764_v40, %v761_v36 }
  0xf6   : > { %v2859_v48 = vpack.c.bf16 %v764_v40, %v764_v40  ;;  %v845_v56 = vrot.slane %v818_v44, %v789_v42  ;;  %v852_v63 = vrot.slane %v2860_v55, %v789_v42 }
  0xf7   : > { %v3470_v49 = vrot.slane %v780_v41, %v789_v42  ;;  %v3472_v50 = vrot.slane %v2858_v43, %v789_v42  ;;  %v779_v51 = vpack.c.bf16 %v776_v46, %v775_v45  ;;  %v2857_v52 = vpack.c.bf16 %v776_v46, %v776_v46 }
  0xf8   : > { %v835_v53 = vrot.slane %v2859_v48, %v789_v42  ;;  %v828_v54 = vrot.slane %v817_v47, %v789_v42  ;;  %v853_v2 = vcombine.high %v845_v56, %v845_v56  ;;  %v3485_v4 = vrot.slane %v845_v56, %v789_v42 }
  0xf9   : > { %v797_v57 = vrot.slane %v2857_v52, %v789_v42  ;;  %v790_v62 = vrot.slane %v779_v51, %v789_v42  ;;  %v854_v5 = vcombine.high %v852_v63, %v852_v63  ;;  %v3491_v7 = vrot.slane %v852_v63, %v789_v42 }
  0xfa   : > { %v3474_v58 = vrot.slane %v835_v53, %v789_v42  ;;  %v837_v59 = vcombine.high %v835_v53, %v835_v53  ;;  %v861_v60 = vrot.slane %v828_v54, %v789_v42  ;;  %v836_v61 = vcombine.high %v828_v54, %v828_v54 }
  0xfb   : > { %v3483_v3 = vrot.slane %v853_v2, %v789_v42  ;;  %v3489_v6 = vrot.slane %v854_v5, %v789_v42  ;;  %v798_v23 = vcombine.high %v790_v62, %v790_v62  ;;  %v799_v28 = vcombine.high %v797_v57, %v797_v57 }
  0xfc   : > { %972 = vrot.lane.b32.xlu1 %v3474_v58, %s3208_s27  ;;  %862 = vrot.lane.b32.xlu0 %v861_v60, %s3208_s27  ;;  %v3477_v0 = vrot.slane %v837_v59, %v789_v42  ;;  %v3479_v1 = vrot.slane %v836_v61, %v789_v42  ;;  %v815_v34 = vcombine.high %v3470_v49, %v3470_v49 }
  0xfd   : > { %v816_v39 = vcombine.high %v3472_v50, %v3472_v50 }
 0x100   : > { %1027 = vrot.lane.b32.xlu1 %v3477_v0, %s3208_s27  ;;  %917 = vrot.lane.b32.xlu0 %v3479_v1, %s3208_s27 }
 0x104   : > { %1137 = vrot.lane.b32.xlu1 %v3483_v3, %s3208_s27  ;;  %1082 = vrot.lane.b32.xlu0 %v3485_v4, %s3208_s27 }
 0x108   : > { %1247 = vrot.lane.b32.xlu1 %v3489_v6, %s3208_s27  ;;  %1192 = vrot.lane.b32.xlu0 %v3491_v7, %s3208_s27 }
 0x10c   : > { %1392 = vrot.lane.b32.xlu1 %v861_v60, %s3209_s19 }
 0x16e   : > { %v863_v8 = vpop.permute.xlu0 %862  ;;  %v973_v14 = vpop.permute.xlu1 %972 }
 0x16f   : > { %v868_v9 = vsel %vm719_vm1, %v863_v8, 0  ;;  %v978_v21 = vsel %vm719_vm1, %v973_v14, 0 }
 0x170   : > { %2965 = vmatpush3.bf16.xpose.msra.mxu1 %v868_v9 }
 0x171   : > { %2976 = vmatprep.subr.bf16.mxu1 %v3206_v32 }
 0x172   : > { %v918_v17 = vpop.permute.xlu0 %917  ;;  %v1028_v22 = vpop.permute.xlu1 %1027 }
 0x173   : > { %v923_v20 = vsel %vm719_vm1, %v918_v17, 0  ;;  %v1033_v24 = vsel %vm719_vm1, %v1028_v22, 0 }
 0x174   : > { %2971 = vmatpush3.bf16.xpose.msra.mxu0 %v923_v20 }
 0x175   : > { %2982 = vmatprep.subr.bf16.mxu0 %v3206_v32 }
 0x176   : > { %v1083_v25 = vpop.permute.xlu0 %1082  ;;  %v1138_v27 = vpop.permute.xlu1 %1137 }
 0x177   : > { %2967 = vmatmul.mubr.msk.bf16.vlgmr.msra.gmra.mxu1 %vm719_vm1, %v790_v62  ;;  %v1088_v26 = vsel %vm719_vm1, %v1083_v25, 0  ;;  %v1143_v29 = vsel %vm719_vm1, %v1138_v27, 0 }
 0x178   : > { %2977 = vmatpush3.bf16.xpose.msra.mxu1 %v978_v21  ;;  %2978 = vmatprep.mubr.msk.bf16.mxu1 %vm3207_vm2, %v3206_v32 }
 0x179   : > { %2988 = vmatprep.subr.bf16.mxu1 %v3206_v32 }
 0x17a   : > { %v1193_v30 = vpop.permute.xlu0 %1192  ;;  %v1248_v31 = vpop.permute.xlu1 %1247 }
 0x17b   : > { %2973 = vmatmul.mubr.msk.bf16.vlgmr.msra.gmra.mxu0 %vm719_vm1, %v798_v23  ;;  %v1198_v33 = vsel %vm719_vm1, %v1193_v30, 0  ;;  %v1253_v36 = vsel %vm719_vm1, %v1248_v31, 0 }
 0x17c   : > { %2983 = vmatpush3.bf16.xpose.msra.mxu0 %v1033_v24  ;;  %2984 = vmatprep.mubr.msk.bf16.mxu0 %vm3207_vm2, %v3206_v32 }
 0x17d   : > { %2994 = vmatprep.subr.bf16.mxu0 %v3206_v32 }
 0x17e   : > { %v1393_v37 = vpop.permute.xlu1 %1392 }
 0x17f   : > { %2979 = vmatmul.mubr.msk.bf16.vlgmr.msra.gmra.mxu1 %vm719_vm1, %v797_v57  ;;  %v1400_v38 = vsel %vm1398_vm3, %v1393_v37, 0 }
 0x180   : > { %2989 = vmatpush3.bf16.xpose.msra.mxu1 %v1088_v26  ;;  %2990 = vmatprep.mubr.msk.bf16.mxu1 %vm3207_vm2, %v3206_v32 }
 0x181   : > { %3000 = vmatprep.subr.bf16.mxu1 %v3206_v32 }
 0x183   : > { %2985 = vmatmul.mubr.msk.bf16.vlgmr.msra.gmra.mxu0 %vm719_vm1, %v799_v28 }
 0x184   : > { %2995 = vmatpush3.bf16.xpose.msra.mxu0 %v1143_v29  ;;  %2996 = vmatprep.mubr.msk.bf16.mxu0 %vm3207_vm2, %v3206_v32 }
 0x185   : > { %3006 = vmatprep.subr.bf16.mxu0 %v3206_v32 }
 0x187   : > { %2991 = vmatmul.mubr.msk.bf16.vlgmr.msra.gmra.mxu1 %vm719_vm1, %v3470_v49 }
 0x188   : > { %3001 = vmatpush3.bf16.xpose.msra.mxu1 %v1198_v33  ;;  %3002 = vmatprep.mubr.msk.bf16.mxu1 %vm3207_vm2, %v3206_v32 }
 0x189   : > { %3012 = vmatprep.subr.bf16.mxu1 %v3206_v32 }
 0x18b   : > { %2997 = vmatmul.mubr.msk.bf16.vlgmr.msra.gmra.mxu0 %vm719_vm1, %v815_v34 }
 0x18c   : > { %3007 = vmatpush3.bf16.xpose.msra.mxu0 %v1253_v36  ;;  %3008 = vmatprep.mubr.msk.bf16.mxu0 %vm3207_vm2, %v3206_v32 }
 0x18d   : > { %3018 = vmatprep.subr.bf16.mxu0 %v3206_v32 }
 0x18f   : > { %3003 = vmatmul.mubr.msk.bf16.vlgmr.msra.gmra.mxu1 %vm719_vm1, %v3472_v50 }
 0x190   : > { %3013 = vmatpush3.bf16.msra.mxu1 %v1400_v38  ;;  %3014 = vmatprep.mubr.msk.bf16.mxu1 %vm3207_vm2, %v3206_v32 }
 0x191   : > { %3024 = vmatprep.subr.bf16.mxu1 %v3206_v32 }
 0x193   : > { %3009 = vmatmul.mubr.msk.bf16.vlgmr.msra.gmra.mxu0 %vm719_vm1, %v816_v39 }
 0x194   : > { %3020 = vmatprep.mubr.msk.bf16.mxu0 %vm3207_vm2, %v3206_v32 }
 0x237   : > { %v904_v40 = vpop.f32.mrf.mxu1 }
 0x238   : > { %v1296_v41 = vsel %vm1295_vm4, %v904_v40, -inf }
 0x239   : > { %1297 = vmax.xlane.f32.xlu0 %v1296_v41  ;;  %v2968_v42 = vpop.f32.mrf.mxu1 }
 0x23b   : > { %v907_v43 = vpop.f32.mrf.mxu1  ;;  %v959_v44 = vpop.f32.mrf.mxu0 }
 0x23c   : > { %v1299_v45 = vsel %vm1295_vm4, %v959_v44, -inf }
 0x23d   : > { %v2969_v46 = vpop.f32.mrf.mxu1  ;;  %1300 = vmax.xlane.f32.xlu1 %v1299_v45  ;;  %v2974_v47 = vpop.f32.mrf.mxu0 }
 0x23f   : > { %v962_v48 = vpop.f32.mrf.mxu0  ;;  %v1014_v49 = vpop.f32.mrf.mxu1 }
 0x240   : > { %v1302_v50 = vsel %vm1295_vm4, %v1014_v49, -inf }
 0x241   : > { %1303 = vmax.xlane.f32.xlu0 %v1302_v50  ;;  %v2975_v51 = vpop.f32.mrf.mxu0  ;;  %v2980_v52 = vpop.f32.mrf.mxu1 }
 0x243   : > { %v1017_v53 = vpop.f32.mrf.mxu1  ;;  %v1069_v54 = vpop.f32.mrf.mxu0 }
 0x244   : > { %v1305_v55 = vsel %vm1295_vm4, %v1069_v54, -inf }
 0x245   : > { %v2981_v56 = vpop.f32.mrf.mxu1  ;;  %1306 = vmax.xlane.f32.xlu0 %v1305_v55  ;;  %v2986_v57 = vpop.f32.mrf.mxu0 }
 0x247   : > { %v1072_v59 = vpop.f32.mrf.mxu0  ;;  %v3548_v60 = vpop.f32.mrf.mxu1 }
 0x248   : > { %v1308_v61 = vsel %vm1295_vm4, %v3548_v60, -inf }
 0x249   : > { %v2992_v62 = vpop.f32.mrf.mxu1  ;;  %1309 = vmax.xlane.f32.xlu1 %v1308_v61  ;;  %v2987_v63 = vpop.f32.mrf.mxu0 }
 0x24b   : > { %v1127_v2 = vpop.f32.mrf.mxu1  ;;  %v3552_v5 = vpop.f32.mrf.mxu0 }
 0x24c   : > { %v1311_v8 = vsel %vm1295_vm4, %v3552_v5, -inf }
 0x24d   : > { %v2993_v9 = vpop.f32.mrf.mxu1  ;;  %1312 = vmax.xlane.f32.xlu0 %v1311_v8  ;;  %v2998_v14 = vpop.f32.mrf.mxu0 }
 0x24f   : > { %v1182_v17 = vpop.f32.mrf.mxu0  ;;  %v1234_v20 = vpop.f32.mrf.mxu1 }
 0x250   : > { %v1314_v21 = vsel %vm1295_vm4, %v1234_v20, -inf }
 0x251   : > { %v3004_v22 = vpop.f32.mrf.mxu1  ;;  %1315 = vmax.xlane.f32.xlu1 %v1314_v21  ;;  %v2999_v23 = vpop.f32.mrf.mxu0 }
 0x253   : > { %v1237_v24 = vpop.f32.mrf.mxu1  ;;  %v1289_v25 = vpop.f32.mrf.mxu0 }
 0x254   : > { %v1317_v26 = vsel %vm1295_vm4, %v1289_v25, -inf }
 0x255   : > { %v3005_v27 = vpop.f32.mrf.mxu1  ;;  %1318 = vmax.xlane.f32.xlu0 %v1317_v26  ;;  %v3010_v28 = vpop.f32.mrf.mxu0 }
 0x257   : > { %v1292_v29 = vpop.f32.mrf.mxu0 }
 0x259   : > { %v3011_v30 = vpop.f32.mrf.mxu0 }
 0x262   : > { %1490 = vrot.lane.b32.xlu1 %v3474_v58, %s3209_s19 }
 0x266   : > { %1538 = vrot.lane.b32.xlu1 %v3477_v0, %s3209_s19 }
 0x26b   : > { %1442 = vrot.lane.b32.xlu0 %v3479_v1, %s3209_s19 }
 0x2c2   : > { %v1298_v31 = vpop.xlane.xlu0 %1297 }
 0x2c3   : > { %v1320_v33 = vsub.f32 %v904_v40, %v1298_v31 }
 0x2c5   : > { %v1328_v34 = vmul.f32 1.442695, %v1320_v33 }
 0x2c6   : > { %v1301_v36 = vpop.xlane.xlu1 %1300 }
 0x2c7   : > { %3133 = vpow2.f32 %v1328_v34  ;;  %v1321_v37 = vsub.f32 %v959_v44, %v1301_v36 }
 0x2c9   : > { %v1330_v38 = vmul.f32 1.442695, %v1321_v37 }
 0x2ca   : > { %v1304_v39 = vpop.xlane.xlu0 %1303 }
 0x2cb   : > { %3135 = vpow2.f32 %v1330_v38  ;;  %v1322_v41 = vsub.f32 %v1014_v49, %v1304_v39 }
 0x2cd   : > { %v1332_v42 = vmul.f32 1.442695, %v1322_v41 }
 0x2ce   : > { %v1307_v43 = vpop.xlane.xlu0 %1306 }
 0x2cf   : > { %3137 = vpow2.f32 %v1332_v42  ;;  %v1323_v58 = vsub.f32 %v1069_v54, %v1307_v43 }
 0x2d1   : > { %v1334_v45 = vmul.f32 1.442695, %v1323_v58 }
 0x2d2   : > { %v1310_v54 = vpop.xlane.xlu1 %1309 }
 0x2d3   : > { %3139 = vpow2.f32 %v1334_v45  ;;  %v1324_v55 = vsub.f32 %v3548_v60, %v1310_v54 }
 0x2d4   : > { %v3134_v0 = vpop.eup %3133 }
 0x2d5   : > { %v1344_v46 = vsel %vm1295_vm4, %v3134_v0, 0.0  ;;  %v1336_v59 = vmul.f32 1.442695, %v1324_v55 }
 0x2d6   : > { %1345 = vadd.xlane.f32.xlu1 %v1344_v46  ;;  %v1313_v47 = vpop.xlane.xlu0 %1312 }
 0x2d7   : > { %v1325_v57 = vsub.f32 %v3552_v5, %v1313_v47  ;;  %3141 = vpow2.f32 %v1336_v59 }
 0x2d8   : > { %v3136_v1 = vpop.eup %3135 }
 0x2d9   : > { %v1347_v40 = vsel %vm1295_vm4, %v3136_v1, 0.0  ;;  %v1338_v62 = vmul.f32 1.442695, %v1325_v57 }
 0x2da   : > { %1348 = vadd.xlane.f32.xlu0 %v1347_v40  ;;  %v1316_v56 = vpop.xlane.xlu1 %1315 }
 0x2db   : > { %v1326_v61 = vsub.f32 %v1234_v20, %v1316_v56  ;;  %3143 = vpow2.f32 %v1338_v62 }
 0x2dc   : > { %v3566_v44 = vpop.eup %3137 }
 0x2dd   : > { %v1350_v48 = vsel %vm1295_vm4, %v3566_v44, 0.0  ;;  %v1340_v63 = vmul.f32 1.442695, %v1326_v61 }
 0x2de   : > { %1351 = vadd.xlane.f32.xlu1 %v1350_v48  ;;  %v1319_v49 = vpop.xlane.xlu0 %1318  ;;  %v1491_v21 = vpop.permute.xlu1 %1490 }
 0x2df   : > { %v1327_v2 = vsub.f32 %v1289_v25, %v1319_v49  ;;  %3145 = vpow2.f32 %v1340_v63 }
 0x2e0   : > { %v3570_v50 = vpop.eup %3139 }
 0x2e1   : > { %v1353_v51 = vsel %vm1295_vm4, %v3570_v50, 0.0  ;;  %v1342_v8 = vmul.f32 1.442695, %v1327_v2  ;;  %v3125_v2 = vld [vmem:[%s3891_s23 + $0x8] sm:$0xff]  }
 0x2e2   : > { %1354 = vadd.xlane.f32.xlu0 %v1353_v51  ;;  %v1443_v52 = vpop.permute.xlu0 %1442  ;;  %v1539_v22 = vpop.permute.xlu1 %1538 }
 0x2e3   : > { %v1448_v53 = vsel %vm1398_vm3, %v1443_v52, 0  ;;  %3147 = vpow2.f32 %v1342_v8  ;;  %v1544_v34 = vsel %vm1398_vm3, %v1539_v22, 0  ;;  %v3126_v8 = vld [vmem:[%s3891_s23] sm:$0xff]  }
 0x2e4   : > { %3019 = vmatpush3.bf16.msra.mxu0 %v1448_v53 }
 0x2e5   : > { %3030 = vmatprep.subr.bf16.mxu0 %v3206_v32 }
 0x2ef   : > { %1634 = vrot.lane.b32.xlu1 %v3483_v3, %s3209_s19  ;;  %v3582_v3 = vpop.eup %3141 }
 0x2f0   : > { %v3584_v9 = vpop.eup %3143 }
 0x2f1   : > { %v3588_v60 = vpop.eup %3145  ;;  %v1359_v14 = vsel %vm1295_vm4, %v3584_v9, 0.0 }
 0x2f2   : > { %v1362_v5 = vsel %vm1295_vm4, %v3588_v60, 0.0  ;;  %v3594_v17 = vpop.eup %3147 }
 0x2f3   : > { %v1365_v20 = vsel %vm1295_vm4, %v3594_v17, 0.0 }
 0x2f8   : > { %1586 = vrot.lane.b32.xlu0 %v3485_v4, %s3209_s19  ;;  %v1356_v4 = vsel %vm1295_vm4, %v3582_v3, 0.0 }
 0x313   : > { %1357 = vadd.xlane.f32.xlu1 %v1356_v4 }
 0x317   : > { %1363 = vadd.xlane.f32.xlu1 %v1362_v5  ;;  %1360 = vadd.xlane.f32.xlu0 %v1359_v14 }
 0x31b   : > { %1366 = vadd.xlane.f32.xlu0 %v1365_v20 }
 0x328   : > { %1730 = vrot.lane.b32.xlu1 %v3489_v6, %s3209_s19  ;;  %v1496_v6 = vsel %vm1398_vm3, %v1491_v21, 0 }
 0x331   : > { %1682 = vrot.lane.b32.xlu0 %v3491_v7, %s3209_s19 }
 0x35f   : > { %v1346_v23 = vpop.xlane.xlu1 %1345 }
 0x360   : > { %3149 = vrcp.f32 %v1346_v23 }
 0x363   : > { %v1349_v24 = vpop.xlane.xlu0 %1348 }
 0x364   : > { %3151 = vrcp.f32 %v1349_v24 }
 0x367   : > { %v1352_v25 = vpop.xlane.xlu1 %1351 }
 0x368   : > { %3153 = vrcp.f32 %v1352_v25 }
 0x36b   : > { %v1355_v26 = vpop.xlane.xlu0 %1354  ;;  %v1635_v43 = vpop.permute.xlu1 %1634 }
 0x36c   : > { %3155 = vrcp.f32 %v1355_v26  ;;  %v1640_v45 = vsel %vm1398_vm3, %v1635_v43, 0 }
 0x36d   : > { %v3150_v27 = vpop.eup %3149 }
 0x36e   : > { %v1376_v28 = vmul.f32 %v3150_v27, %v3134_v0 }
 0x36f   : > { %v1587_v37 = vpop.permute.xlu0 %1586 }
 0x370   : > { %v1384_v29 = vpack.c.bf16 %v1376_v28, %v1376_v28  ;;  %v1592_v41 = vsel %vm1398_vm3, %v1587_v37, 0 }
 0x371   : > { %v3152_v30 = vpop.eup %3151 }
 0x372   : > { %3015 = vmatmul.mubr.msk.bf16.vlgmr.msra.gmra.mxu1 %vm1394_vm5, %v1384_v29  ;;  %v1377_v7 = vmul.f32 %v3152_v30, %v3136_v1 }
 0x373   : > { %3025 = vmatpush3.bf16.msra.mxu1 %v1496_v6  ;;  %3026 = vmatprep.mubr.msk.bf16.mxu1 %vm3207_vm2, %v3206_v32 }
 0x374   : > { %v1385_v31 = vpack.c.bf16 %v1377_v7, %v1377_v7  ;;  %3036 = vmatprep.subr.bf16.mxu1 %v3206_v32 }
 0x375   : > { %v3154_v33 = vpop.eup %3153 }
 0x376   : > { %3021 = vmatmul.mubr.msk.bf16.vlgmr.msra.gmra.mxu0 %vm1394_vm5, %v1385_v31  ;;  %v1378_v36 = vmul.f32 %v3154_v33, %v3566_v44 }
 0x377   : > { %3031 = vmatpush3.bf16.msra.mxu0 %v1544_v34  ;;  %3032 = vmatprep.mubr.msk.bf16.mxu0 %vm3207_vm2, %v3206_v32 }
 0x378   : > { %v1386_v38 = vpack.c.bf16 %v1378_v36, %v1378_v36  ;;  %3042 = vmatprep.subr.bf16.mxu0 %v3206_v32 }
 0x379   : > { %v3156_v39 = vpop.eup %3155 }
 0x37a   : > { %3027 = vmatmul.mubr.msk.bf16.vlgmr.msra.gmra.mxu1 %vm1394_vm5, %v1386_v38  ;;  %v1379_v42 = vmul.f32 %v3156_v39, %v3570_v50 }
 0x37b   : > { %3037 = vmatpush3.bf16.msra.mxu1 %v1592_v41  ;;  %3038 = vmatprep.mubr.msk.bf16.mxu1 %vm3207_vm2, %v3206_v32 }
 0x37c   : > { %v1387_v58 = vpack.c.bf16 %v1379_v42, %v1379_v42  ;;  %3048 = vmatprep.subr.bf16.mxu1 %v3206_v32 }
 0x37e   : > { %3033 = vmatmul.mubr.msk.bf16.vlgmr.msra.gmra.mxu0 %vm1394_vm5, %v1387_v58 }
 0x37f   : > { %3043 = vmatpush3.bf16.msra.mxu0 %v1640_v45  ;;  %3044 = vmatprep.mubr.msk.bf16.mxu0 %vm3207_vm2, %v3206_v32 }
 0x380   : > { %3054 = vmatprep.subr.bf16.mxu0 %v3206_v32 }
 0x39c   : > { %v1358_v0 = vpop.xlane.xlu1 %1357 }
 0x39d   : > { %3157 = vrcp.f32 %v1358_v0 }
 0x3a0   : > { %v1364_v46 = vpop.xlane.xlu1 %1363  ;;  %v1361_v1 = vpop.xlane.xlu0 %1360 }
 0x3a1   : > { %3159 = vrcp.f32 %v1364_v46 }
 0x3a2   : > { %3161 = vrcp.f32 %v1361_v1 }
 0x3a4   : > { %v1367_v40 = vpop.xlane.xlu0 %1366  ;;  %v1731_v54 = vpop.permute.xlu1 %1730 }
 0x3a5   : > { %3163 = vrcp.f32 %v1367_v40  ;;  %v1736_v59 = vsel %vm1398_vm3, %v1731_v54, 0 }
 0x3a8   : > { %v1683_v48 = vpop.permute.xlu0 %1682 }
 0x3a9   : > { %v1688_v52 = vsel %vm1398_vm3, %v1683_v48, 0 }
 0x3aa   : > { %v3158_v47 = vpop.eup %3157 }
 0x3ab   : > { %v1380_v44 = vmul.f32 %v3158_v47, %v3582_v3 }
 0x3ad   : > { %v1388_v49 = vpack.c.bf16 %v1380_v44, %v1380_v44  ;;  %v2877_v44 = vld [vmem:[%s3892_s16] ss:$0 sm:$0xff] }
 0x3ae   : > { %v3160_v50 = vpop.eup %3159 }
 0x3af   : > { %v3162_v51 = vpop.eup %3161  ;;  %3039 = vmatmul.mubr.msk.bf16.vlgmr.msra.gmra.mxu1 %vm1394_vm5, %v1388_v49  ;;  %v1382_v55 = vmul.f32 %v3160_v50, %v3588_v60 }
 0x3b0   : > { %3049 = vmatpush3.bf16.msra.mxu1 %v1688_v52  ;;  %v1381_v53 = vmul.f32 %v3162_v51, %v3584_v9  ;;  %3050 = vmatprep.mubr.msk.bf16.mxu1 %vm3207_vm2, %v3206_v32 }
 0x3b1   : > { %v1390_v61 = vpack.c.bf16 %v1382_v55, %v1382_v55  ;;  %3060 = vmatprep.subr.bf16.mxu1 %v3125_v2 }
 0x3b2   : > { %v1389_v56 = vpack.c.bf16 %v1381_v53, %v1381_v53  ;;  %v3164_v57 = vpop.eup %3163 }
 0x3b3   : > { %v1383_v62 = vmul.f32 %v3164_v57, %v3594_v17 }
 0x3b4   : > { %3045 = vmatmul.mubr.msk.bf16.vlgmr.msra.gmra.mxu0 %vm1394_vm5, %v1389_v56 }
 0x3b5   : > { %3055 = vmatpush3.bf16.msra.mxu0 %v1736_v59  ;;  %3056 = vmatprep.mubr.msk.bf16.mxu0 %vm3207_vm2, %v3206_v32  ;;  %v1391_v63 = vpack.c.bf16 %v1383_v62, %v1383_v62 }
 0x3b7   : > { %3051 = vmatmul.mubr.msk.bf16.vlgmr.msra.gmra.mxu1 %vm1394_vm5, %v1390_v61 }
 0x3b8   : > { %3061 = vmatpush3.bf16.msra.mxu1 %v3125_v2 }
 0x3b9   : > { %3062 = vmatprep.subr.bf16.mxu1 %v3126_v8 }
 0x3bc   : > { %3057 = vmatmul.mubr.msk.bf16.vlgmr.msra.gmra.mxu0 %vm1394_vm5, %v1391_v63  ;;  %3063 = vmatpush3.bf16.msra.mxu1 %v3126_v8 }
 0x432   : > { %v1436_v3 = vpop.f32.mrf.mxu1 }
 0x434   : > { %v3016_v9 = vpop.f32.mrf.mxu1 }
 0x436   : > { %v1439_v4 = vpop.f32.mrf.mxu1  ;;  %v1484_v60 = vpop.f32.mrf.mxu0 }
 0x437   : > { %v1786_v24 = vcombine.low %v1436_v3, %v1484_v60 }
 0x438   : > { %v3017_v5 = vpop.f32.mrf.mxu1  ;;  %v3022_v14 = vpop.f32.mrf.mxu0 }
 0x43a   : > { %v1487_v32 = vpop.f32.mrf.mxu0  ;;  %v1532_v20 = vpop.f32.mrf.mxu1 }
 0x43c   : > { %v3023_v17 = vpop.f32.mrf.mxu0  ;;  %v3028_v21 = vpop.f32.mrf.mxu1 }
 0x43d   : > { %v3211_v21 = vmov 1985246804  }
 0x43e   : > { %v1535_v22 = vpop.f32.mrf.mxu1  ;;  %v1580_v23 = vpop.f32.mrf.mxu0 }
 0x43f   : > { %v1787_v25 = vcombine.low %v1532_v20, %v1580_v23 }
 0x440   : > { %v3029_v26 = vpop.f32.mrf.mxu1  ;;  %v3034_v27 = vpop.f32.mrf.mxu0 }
 0x441   : > { %v1794_v28 = vpack.c.bf16 %v1787_v25, %v1786_v24 }
 0x442   : > { %v1583_v29 = vpop.f32.mrf.mxu0 }
 0x443   : > { %3064 = vmatprep.mubr.msk.bf16.mxu1 %vm719_vm1, %v1794_v28 }
 0x444   : > { %v3035_v30 = vpop.f32.mrf.mxu0 }
 0x46f   : > { %v1628_v6 = vpop.f32.mrf.mxu1 }
 0x471   : > { %v3040_v7 = vpop.f32.mrf.mxu1 }
 0x473   : > { %v1631_v31 = vpop.f32.mrf.mxu1 }
 0x474   : > { %v1676_v33 = vpop.f32.mrf.mxu0 }
 0x475   : > { %v3041_v34 = vpop.f32.mrf.mxu1  ;;  %v1788_v58 = vcombine.low %v1628_v6, %v1676_v33 }
 0x476   : > { %v3046_v36 = vpop.f32.mrf.mxu0 }
 0x477   : > { %v1724_v37 = vpop.f32.mrf.mxu1 }
 0x478   : > { %v1679_v38 = vpop.f32.mrf.mxu0 }
 0x479   : > { %v3052_v39 = vpop.f32.mrf.mxu1 }
 0x47a   : > { %v3047_v41 = vpop.f32.mrf.mxu0 }
 0x47b   : > { %v1727_v42 = vpop.f32.mrf.mxu1 }
 0x47c   : > { %v1772_v43 = vpop.f32.mrf.mxu0 }
 0x47d   : > { %v1789_v45 = vcombine.low %v1724_v37, %v1772_v43  ;;  %v3053_v0 = vpop.f32.mrf.mxu1 }
 0x47e   : > { %v3058_v46 = vpop.f32.mrf.mxu0 }
 0x47f   : > { %v1795_v1 = vpack.c.bf16 %v1789_v45, %v1788_v58 }
 0x480   : > { %v1775_v40 = vpop.f32.mrf.mxu0 }
 0x481   : > { %3065 = vmatmul.mubr.msk.bf16.vlgmr.msra.gmra.mxu1 %vm719_vm1, %v1795_v1 }
 0x482   : > { %v3059_v47 = vpop.f32.mrf.mxu0 }
 0x541   : > { %v3066_v48 = vpop.f32.mrf.mxu1 }
 0x542   : > { %v1868_v49 = vadd.f32 %v3066_v48, %v2877_v44 }
 0x543   : > { %v1859_v50 = vpop.f32.mrf.mxu1 }
 0x544   : > { %v1880_v51 = vcombine.high %v1868_v49, %v1868_v49  ;;  %v1860_v52 = vadd.f32 %v2877_v44, %v1859_v50  ;;  %v1890_v2 = vadd.f32 %v1868_v49, %v3431_v15 }
 0x545   : > { %v3067_v53 = vpop.f32.mrf.mxu1 }
 0x546   : > { %v1878_v54 = vcombine.high %v1860_v52, %v1860_v52  ;;  %v1871_v55 = vadd.f32 %v3067_v53, %v2877_v44  ;;  %v1891_v57 = vadd.f32 %v1880_v51, %v3436_v16  ;;  %v1886_v59 = vadd.f32 %v1860_v52, %v3409_v10 }
 0x547   : > { %v1862_v56 = vpop.f32.mrf.mxu1 }
 0x548   : > { %v1881_v61 = vcombine.high %v1871_v55, %v1871_v55  ;;  %v1863_v62 = vadd.f32 %v2877_v44, %v1862_v56  ;;  %v1887_v63 = vadd.f32 %v1878_v54, %v3414_v11  ;;  %v1904_v9 = vcombine.low %v1890_v2, %v1891_v57 }
 0x549   : > { %v1892_v10 = vadd.f32 %v1871_v55, %v3443_v18 }
 0x54a   : > { %v1879_v8 = vcombine.high %v1863_v62, %v1863_v62  ;;  %v1902_v3 = vcombine.low %v1886_v59, %v1887_v63  ;;  %v1888_v4 = vadd.f32 %v1863_v62, %v3419_v12  ;;  %v1893_v14 = vadd.f32 %v1881_v61, %v3448_v19  ;;  %v3127_v62 = vld [vmem:[%s3332_s1 + $0x8] sm:$0xff]  }
 0x54b   : > { %v1916_v11 = vsel %vm719_vm1, %v1904_v9, 0.0  ;;  %v3210_v12 = vmov 839922192   ;;  %3068 = vmatprep.subr.bf16.mxu0 %v3127_v62 }
 0x54c   : > { %v1910_v60 = vsel %vm719_vm1, %v1902_v3, 0.0  ;;  %v1889_v5 = vadd.f32 %v1879_v8, %v3424_v13  ;;  %v1905_v15 = vcombine.low %v1892_v10, %v1893_v14  ;;  %v1932_v17 = vunpack.c.l.s4 %v3210_v12  ;;  %3069 = vmatpush3.bf16.msra.mxu0 %v3127_v62  ;;  %v3131_v62 = vld [vmem:[%s3342_s28 + $0x8] sm:$0xff]  }
 0x54d   : > { %1911 = vadd.xlane.f32.xlu0 %v1910_v60  ;;  %v1939_v13 = vunpack.c.l.s4 %v3211_v21 }
 0x54e   : > { %v1903_v16 = vcombine.low %v1888_v4, %v1889_v5  ;;  %v1919_v20 = vsel %vm719_vm1, %v1905_v15, 0.0  ;;  %v1933_v22 = vunpack.c.0.s8 %v1932_v17 }
 0x54f   : > { %v1940_v19 = vunpack.c.0.s8 %v1939_v13 }
 0x550   : > { %v1913_v32 = vsel %vm719_vm1, %v1903_v16, 0.0  ;;  %v3660_v23 = vsub.s32 %v1933_v22, %v3463_v35  ;;  %v2883_v22 = vld [vmem:[%s3894_s13] ss:$0 sm:$0xff] }
 0x551   : > { %1914 = vadd.xlane.f32.xlu1 %v1913_v32  ;;  %1917 = vadd.xlane.f32.xlu0 %v1916_v11  ;;  %v3663_v18 = vsub.s32 %v1940_v19, %v3463_v35 }
 0x555   : > { %1920 = vadd.xlane.f32.xlu0 %v1919_v20  ;;  %v2882_v20 = vld [vmem:[%s3893_s30] ss:$0 sm:$0xff] }
 0x556   : > { %v2134_v13 = vcombine.high %v2882_v20, %v2882_v20 }
 0x5d6   : > { %v1912_v24 = vpop.xlane.xlu0 %1911 }
 0x5d7   : > { %v1923_v25 = vmul.f32 0.03125, %v1912_v24 }
 0x5d9   : > { %v1937_v26 = vrot.slane %v1923_v25, %v3660_v23  ;;  %v1944_v27 = vrot.slane %v1923_v25, %v3663_v18 }
 0x5da   : > { %v1915_v28 = vpop.xlane.xlu1 %1914  ;;  %v1918_v29 = vpop.xlane.xlu0 %1917 }
 0x5db   : > { %v3667_v30 = vsub.f32 %v1886_v59, %v1937_v26  ;;  %v3669_v6 = vsub.f32 %v1887_v63, %v1944_v27  ;;  %v1924_v7 = vmul.f32 0.03125, %v1915_v28  ;;  %v1925_v31 = vmul.f32 0.03125, %v1918_v29  ;;  %v3128_v63 = vld [vmem:[%s3332_s1] sm:$0xff]  }
 0x5dc   : > { %3070 = vmatprep.subr.bf16.mxu0 %v3128_v63  ;;  %v2151_v29 = vcombine.high %v2883_v22, %v2883_v22 }
 0x5dd   : > { %v1951_v33 = vrot.slane %v1924_v7, %v3660_v23  ;;  %v1958_v34 = vrot.slane %v1924_v7, %v3663_v18  ;;  %v1965_v35 = vrot.slane %v1925_v31, %v3660_v23  ;;  %v1972_v36 = vrot.slane %v1925_v31, %v3663_v18  ;;  %3071 = vmatpush3.bf16.msra.mxu0 %v3128_v63  ;;  %v3132_v63 = vld [vmem:[%s3342_s28] sm:$0xff]  }
 0x5de   : > { %v1921_v37 = vpop.xlane.xlu0 %1920  ;;  %v2003_v38 = vmul.f32 %v3667_v30, %v3667_v30  ;;  %v2004_v39 = vmul.f32 %v3669_v6, %v3669_v6 }
 0x5df   : > { %v3679_v41 = vsub.f32 %v1888_v4, %v1951_v33  ;;  %v3681_v42 = vsub.f32 %v1889_v5, %v1958_v34  ;;  %v3683_v43 = vsub.f32 %v1890_v2, %v1965_v35  ;;  %v3685_v58 = vsub.f32 %v1891_v57, %v1972_v36  ;;  %v3129_v2 = vld [vmem:[%s3342_s28 + $0x18] sm:$0xff]  }
 0x5e0   : > { %v1926_v45 = vmul.f32 0.03125, %v1921_v37  ;;  %v2019_v0 = vcombine.low %v2003_v38, %v2004_v39  ;;  %3076 = vmatprep.subr.bf16.mxu1 %v3129_v2 }
 0x5e1   : > { %v2005_v46 = vmul.f32 %v3679_v41, %v3679_v41  ;;  %v2006_v1 = vmul.f32 %v3681_v42, %v3681_v42  ;;  %v2007_v40 = vmul.f32 %v3683_v43, %v3683_v43  ;;  %v2008_v47 = vmul.f32 %v3685_v58, %v3685_v58  ;;  %3077 = vmatpush3.bf16.msra.mxu1 %v3129_v2 }
 0x5e2   : > { %v1979_v44 = vrot.slane %v1926_v45, %v3660_v23  ;;  %v1986_v48 = vrot.slane %v1926_v45, %v3663_v18  ;;  %v2027_v49 = vsel %vm719_vm1, %v2019_v0, 0.0 }
 0x5e3   : > { %2028 = vadd.xlane.f32.xlu1 %v2027_v49  ;;  %v2020_v50 = vcombine.low %v2005_v46, %v2006_v1  ;;  %v2021_v51 = vcombine.low %v2007_v40, %v2008_v47 }
 0x5e4   : > { %v3698_v52 = vsub.f32 %v1892_v10, %v1979_v44  ;;  %v3700_v53 = vsub.f32 %v1893_v14, %v1986_v48 }
 0x5e5   : > { %v2030_v54 = vsel %vm719_vm1, %v2020_v50, 0.0  ;;  %v2033_v55 = vsel %vm719_vm1, %v2021_v51, 0.0 }
 0x5e6   : > { %2031 = vadd.xlane.f32.xlu0 %v2030_v54  ;;  %v2009_v56 = vmul.f32 %v3698_v52, %v3698_v52  ;;  %v2010_v57 = vmul.f32 %v3700_v53, %v3700_v53 }
 0x5e7   : > { %2034 = vadd.xlane.f32.xlu1 %v2033_v55 }
 0x5e8   : > { %v2022_v59 = vcombine.low %v2009_v56, %v2010_v57 }
 0x5ea   : > { %v2036_v61 = vsel %vm719_vm1, %v2022_v59, 0.0 }
 0x5eb   : > { %2037 = vadd.xlane.f32.xlu0 %v2036_v61  ;;  %v3130_v61 = vld [vmem:[%s3342_s28 + $0x10] sm:$0xff]  }
 0x5ec   : > { %3078 = vmatprep.subr.bf16.mxu1 %v3130_v61 }
 0x5ed   : > { %3079 = vmatpush3.bf16.msra.mxu1 %v3130_v61 }
 0x5ee   : > { %3080 = vmatprep.subr.bf16.mxu1 %v3131_v62 }
 0x5f1   : > { %3081 = vmatpush3.bf16.msra.mxu1 %v3131_v62 }
 0x5f2   : > { %3082 = vmatprep.subr.bf16.mxu1 %v3132_v63 }
 0x5f5   : > { %3083 = vmatpush3.bf16.msra.mxu1 %v3132_v63 }
 0x66c   : > { %v2029_v8 = vpop.xlane.xlu1 %2028 }
 0x66d   : > { %v2039_v3 = vmul.f32 0.03125, %v2029_v8 }
 0x66f   : > { %v2043_v9 = vadd.f32 1e-05, %v2039_v3  ;;  %v2032_v4 = vpop.xlane.xlu0 %2031  ;;  %v2884_v3 = vld [vmem:[%s627_s3] ss:$0 sm:$0xff] }
 0x670   : > { %v2035_v60 = vpop.xlane.xlu1 %2034  ;;  %v2040_v5 = vmul.f32 0.03125, %v2032_v4 }
 0x671   : > { %3165 = vrsqrt.f32 %v2043_v9  ;;  %v2041_v14 = vmul.f32 0.03125, %v2035_v60 }
 0x672   : > { %v2044_v10 = vadd.f32 1e-05, %v2040_v5 }
 0x673   : > { %v2045_v16 = vadd.f32 1e-05, %v2041_v14 }
 0x674   : > { %3167 = vrsqrt.f32 %v2044_v10  ;;  %v2038_v32 = vpop.xlane.xlu0 %2037 }
 0x675   : > { %3169 = vrsqrt.f32 %v2045_v16  ;;  %v2042_v11 = vmul.f32 0.03125, %v2038_v32 }
 0x677   : > { %v2046_v15 = vadd.f32 1e-05, %v2042_v11 }
 0x679   : > { %3171 = vrsqrt.f32 %v2046_v15 }
 0x67e   : > { %v3166_v12 = vpop.eup %3165 }
 0x67f   : > { %v2061_v17 = vrot.slane %v3166_v12, %v3660_v23  ;;  %v2068_v21 = vrot.slane %v3166_v12, %v3663_v18 }
 0x681   : > { %v3168_v19 = vpop.eup %3167  ;;  %v2119_v24 = vmul.f32 %v2061_v17, %v3667_v30  ;;  %v2120_v25 = vmul.f32 %v2068_v21, %v3669_v6  ;;  %v2889_v17 = vld [vmem:[%s635_s14] ss:$0 sm:$0xff] }
 0x682   : > { %v3170_v26 = vpop.eup %3169  ;;  %v2075_v27 = vrot.slane %v3168_v19, %v3660_v23  ;;  %v2082_v28 = vrot.slane %v3168_v19, %v3663_v18 }
 0x683   : > { %v2089_v7 = vrot.slane %v3170_v26, %v3660_v23  ;;  %v2096_v31 = vrot.slane %v3170_v26, %v3663_v18  ;;  %v2136_v33 = vmul.f32 %v2882_v20, %v2119_v24  ;;  %v2137_v34 = vmul.f32 %v2134_v13, %v2120_v25 }
 0x684   : > { %v2121_v35 = vmul.f32 %v2075_v27, %v3679_v41  ;;  %v2122_v36 = vmul.f32 %v2082_v28, %v3681_v42 }
 0x685   : > { %v2123_v30 = vmul.f32 %v2089_v7, %v3683_v43  ;;  %v2124_v6 = vmul.f32 %v2096_v31, %v3685_v58  ;;  %v2153_v45 = vadd.f32 %v2883_v22, %v2136_v33  ;;  %v3734_v0 = vadd.f32 %v2151_v29, %v2137_v34 }
 0x686   : > { %v3172_v37 = vpop.eup %3171  ;;  %v2138_v38 = vmul.f32 %v2882_v20, %v2121_v35  ;;  %v2139_v39 = vmul.f32 %v2134_v13, %v2122_v36 }
 0x687   : > { %v2103_v46 = vrot.slane %v3172_v37, %v3660_v23  ;;  %v2110_v1 = vrot.slane %v3172_v37, %v3663_v18  ;;  %v2140_v40 = vmul.f32 %v2882_v20, %v2123_v30  ;;  %v2141_v42 = vmul.f32 %v2134_v13, %v2124_v6 }
 0x688   : > { %v3738_v47 = vadd.f32 %v2883_v22, %v2138_v38  ;;  %v3740_v41 = vadd.f32 %v2151_v29, %v2139_v39  ;;  %v2169_v44 = vcombine.low %v2153_v45, %v3734_v0 }
 0x689   : > { %v2125_v43 = vmul.f32 %v2103_v46, %v3698_v52  ;;  %v2126_v58 = vmul.f32 %v2110_v1, %v3700_v53  ;;  %v2157_v51 = vadd.f32 %v2883_v22, %v2140_v40  ;;  %v2158_v54 = vadd.f32 %v2151_v29, %v2141_v42 }
 0x68a   : > { %v2170_v48 = vcombine.low %v3738_v47, %v3740_v41 }
 0x68b   : > { %v2142_v49 = vmul.f32 %v2882_v20, %v2125_v43  ;;  %v2143_v50 = vmul.f32 %v2134_v13, %v2126_v58  ;;  %v2171_v52 = vcombine.low %v2157_v51, %v2158_v54 }
 0x68c   : > { %v2177_v55 = vpack.c.bf16 %v2170_v48, %v2169_v44 }
 0x68d   : > { %v2159_v56 = vadd.f32 %v2883_v22, %v2142_v49  ;;  %v2160_v57 = vadd.f32 %v2151_v29, %v2143_v50 }
 0x68e   : > { %3072 = vmatprep.mubr.msk.bf16.mxu0 %vm719_vm1, %v2177_v55 }
 0x68f   : > { %v2172_v59 = vcombine.low %v2159_v56, %v2160_v57 }
 0x691   : > { %v2178_v53 = vpack.c.bf16 %v2172_v59, %v2171_v52 }
 0x693   : > { %3073 = vmatmul.mubr.msk.bf16.vlgmr.msra.gmra.mxu0 %vm719_vm1, %v2178_v53 }
 0x753   : > { %v3074_v2 = vpop.f32.mrf.mxu0 }
 0x754   : > { %v2251_v5 = vadd.f32 %v3074_v2, %v2884_v3 }
 0x755   : > { %v2242_v8 = vpop.f32.mrf.mxu0 }
 0x756   : > { %v2243_v4 = vadd.f32 %v2884_v3, %v2242_v8  ;;  %v2259_v15 = vmax.f32 %v2251_v5, 0.0 }
 0x757   : > { %v3075_v9 = vpop.f32.mrf.mxu0 }
 0x758   : > { %v2254_v60 = vadd.f32 %v3075_v9, %v2884_v3  ;;  %v2257_v32 = vmax.f32 %v2243_v4, 0.0 }
 0x759   : > { %v2245_v14 = vpop.f32.mrf.mxu0 }
 0x75a   : > { %v2246_v10 = vadd.f32 %v2884_v3, %v2245_v14  ;;  %v2260_v16 = vmax.f32 %v2254_v60, 0.0 }
 0x75c   : > { %v2258_v11 = vmax.f32 %v2246_v10, 0.0  ;;  %v2262_v12 = vpack.c.bf16 %v2260_v16, %v2259_v15 }
 0x75e   : > { %v2261_v20 = vpack.c.bf16 %v2258_v11, %v2257_v32 }
 0x760   : > { %3084 = vmatprep.mubr.msk.bf16.mxu1 %vm2302_vm6, %v2261_v20 }
 0x761   : > { %3085 = vmatmul.mubr.msk.bf16.vlgmr.msra.gmra.mxu1 %vm2302_vm6, %v2262_v12 }
 0x821   : > { %v3086_v21 = vpop.f32.mrf.mxu1 }
 0x822   : > { %v2352_v13 = vadd.f32 %v3086_v21, %v2889_v17 }
 0x823   : > { %v2343_v22 = vpop.f32.mrf.mxu1 }
 0x824   : > { %v2364_v19 = vcombine.high %v2352_v13, %v2352_v13  ;;  %v2344_v24 = vadd.f32 %v2889_v17, %v2343_v22  ;;  %v2374_v35 = vadd.f32 %v2352_v13, %v2157_v51 }
 0x825   : > { %v3087_v25 = vpop.f32.mrf.mxu1 }
 0x826   : > { %v2362_v26 = vcombine.high %v2344_v24, %v2344_v24  ;;  %v2355_v27 = vadd.f32 %v3087_v25, %v2889_v17  ;;  %v2375_v29 = vadd.f32 %v2364_v19, %v2158_v54  ;;  %v2370_v7 = vadd.f32 %v2344_v24, %v2153_v45 }
 0x827   : > { %v2346_v28 = vpop.f32.mrf.mxu1 }
 0x828   : > { %v2365_v31 = vcombine.high %v2355_v27, %v2355_v27  ;;  %v2347_v33 = vadd.f32 %v2889_v17, %v2346_v28  ;;  %v2371_v34 = vadd.f32 %v2362_v26, %v3734_v0  ;;  %v2388_v6 = vcombine.low %v2374_v35, %v2375_v29 }
 0x829   : > { %v2376_v1 = vadd.f32 %v2355_v27, %v2159_v56 }
 0x82a   : > { %v2363_v36 = vcombine.high %v2347_v33, %v2347_v33  ;;  %v2386_v30 = vcombine.low %v2370_v7, %v2371_v34  ;;  %v2372_v37 = vadd.f32 %v2347_v33, %v3738_v47  ;;  %v2377_v46 = vadd.f32 %v2365_v31, %v2160_v57 }
 0x82b   : > { %v2400_v42 = vsel %vm719_vm1, %v2388_v6, 0.0 }
 0x82c   : > { %v2394_v38 = vsel %vm719_vm1, %v2386_v30, 0.0  ;;  %v2373_v39 = vadd.f32 %v2363_v36, %v3740_v41  ;;  %v2389_v43 = vcombine.low %v2376_v1, %v2377_v46 }
 0x82d   : > { %2395 = vadd.xlane.f32.xlu1 %v2394_v38 }
 0x82e   : > { %v2387_v40 = vcombine.low %v2372_v37, %v2373_v39  ;;  %v2403_v0 = vsel %vm719_vm1, %v2389_v43, 0.0 }
 0x830   : > { %v2397_v45 = vsel %vm719_vm1, %v2387_v40, 0.0 }
 0x831   : > { %2398 = vadd.xlane.f32.xlu0 %v2397_v45  ;;  %2401 = vadd.xlane.f32.xlu1 %v2400_v42 }
 0x835   : > { %2404 = vadd.xlane.f32.xlu0 %v2403_v0 }
 0x8b6   : > { %v2396_v58 = vpop.xlane.xlu1 %2395 }
 0x8b7   : > { %v2406_v47 = vmul.f32 0.03125, %v2396_v58 }
 0x8b9   : > { %v2420_v44 = vrot.slane %v2406_v47, %v3660_v23  ;;  %v2427_v41 = vrot.slane %v2406_v47, %v3663_v18 }
 0x8ba   : > { %v2399_v48 = vpop.xlane.xlu0 %2398  ;;  %v2402_v49 = vpop.xlane.xlu1 %2401 }
 0x8bb   : > { %v2478_v50 = vsub.f32 %v2370_v7, %v2420_v44  ;;  %v2479_v51 = vsub.f32 %v2371_v34, %v2427_v41  ;;  %v2407_v54 = vmul.f32 0.03125, %v2399_v48  ;;  %v2408_v55 = vmul.f32 0.03125, %v2402_v49 }
 0x8bd   : > { %v2434_v56 = vrot.slane %v2407_v54, %v3660_v23  ;;  %v2441_v57 = vrot.slane %v2407_v54, %v3663_v18  ;;  %v2448_v52 = vrot.slane %v2408_v55, %v3660_v23  ;;  %v2455_v59 = vrot.slane %v2408_v55, %v3663_v18 }
 0x8be   : > { %v2405_v53 = vpop.xlane.xlu0 %2404  ;;  %v2486_v61 = vmul.f32 %v2478_v50, %v2478_v50  ;;  %v2487_v62 = vmul.f32 %v2479_v51, %v2479_v51 }
 0x8bf   : > { %v2480_v63 = vsub.f32 %v2372_v37, %v2434_v56  ;;  %v2481_v2 = vsub.f32 %v2373_v39, %v2441_v57  ;;  %v3775_v8 = vsub.f32 %v2374_v35, %v2448_v52  ;;  %v3777_v3 = vsub.f32 %v2375_v29, %v2455_v59  ;;  %v2896_v37 = vld [vmem:[%s638_s17] ss:$0 sm:$0xff] }
 0x8c0   : > { %v2409_v9 = vmul.f32 0.03125, %v2405_v53  ;;  %v2502_v4 = vcombine.low %v2486_v61, %v2487_v62  ;;  %v2897_v39 = vld [vmem:[%s3895_s24] ss:$0 sm:$0xff] }
 0x8c1   : > { %v2488_v60 = vmul.f32 %v2480_v63, %v2480_v63  ;;  %v2489_v5 = vmul.f32 %v2481_v2, %v2481_v2  ;;  %v2490_v14 = vmul.f32 %v3775_v8, %v3775_v8  ;;  %v2491_v10 = vmul.f32 %v3777_v3, %v3777_v3 }
 0x8c2   : > { %v2462_v16 = vrot.slane %v2409_v9, %v3660_v23  ;;  %v2469_v32 = vrot.slane %v2409_v9, %v3663_v18  ;;  %v2510_v11 = vsel %vm719_vm1, %v2502_v4, 0.0  ;;  %v2634_v42 = vcombine.high %v2897_v39, %v2897_v39 }
 0x8c3   : > { %2511 = vadd.xlane.f32.xlu1 %v2510_v11  ;;  %v2503_v15 = vcombine.low %v2488_v60, %v2489_v5  ;;  %v2504_v20 = vcombine.low %v2490_v14, %v2491_v10 }
 0x8c4   : > { %v3786_v12 = vsub.f32 %v2376_v1, %v2462_v16  ;;  %v3788_v17 = vsub.f32 %v2377_v46, %v2469_v32  ;;  %v2617_v46 = vcombine.high %v2896_v37, %v2896_v37 }
 0x8c5   : > { %v2513_v21 = vsel %vm719_vm1, %v2503_v15, 0.0  ;;  %v2516_v13 = vsel %vm719_vm1, %v2504_v20, 0.0 }
 0x8c6   : > { %2514 = vadd.xlane.f32.xlu0 %v2513_v21  ;;  %v2492_v22 = vmul.f32 %v3786_v12, %v3786_v12  ;;  %v2493_v19 = vmul.f32 %v3788_v17, %v3788_v17 }
 0x8c7   : > { %2517 = vadd.xlane.f32.xlu1 %v2516_v13 }
 0x8c8   : > { %v2505_v24 = vcombine.low %v2492_v22, %v2493_v19 }
 0x8ca   : > { %v2519_v25 = vsel %vm719_vm1, %v2505_v24, 0.0 }
 0x8cb   : > { %2520 = vadd.xlane.f32.xlu0 %v2519_v25 }
 0x94c   : > { %v2512_v26 = vpop.xlane.xlu1 %2511 }
 0x94d   : > { %v2522_v27 = vmul.f32 0.03125, %v2512_v26 }
 0x94f   : > { %v2526_v28 = vadd.f32 1e-05, %v2522_v27  ;;  %v2515_v29 = vpop.xlane.xlu0 %2514 }
 0x950   : > { %v2523_v7 = vmul.f32 0.03125, %v2515_v29  ;;  %v2518_v31 = vpop.xlane.xlu1 %2517 }
 0x951   : > { %3173 = vrsqrt.f32 %v2526_v28  ;;  %v2524_v33 = vmul.f32 0.03125, %v2518_v31 }
 0x952   : > { %v2527_v34 = vadd.f32 1e-05, %v2523_v7 }
 0x953   : > { %v2528_v35 = vadd.f32 1e-05, %v2524_v33 }
 0x954   : > { %3175 = vrsqrt.f32 %v2527_v34  ;;  %v2521_v36 = vpop.xlane.xlu0 %2520 }
 0x955   : > { %3177 = vrsqrt.f32 %v2528_v35  ;;  %v2525_v30 = vmul.f32 0.03125, %v2521_v36 }
 0x957   : > { %v2529_v6 = vadd.f32 1e-05, %v2525_v30 }
 0x959   : > { %3179 = vrsqrt.f32 %v2529_v6 }
 0x95e   : > { %v3174_v38 = vpop.eup %3173 }
 0x95f   : > { %v2544_v1 = vrot.slane %v3174_v38, %v3660_v23  ;;  %v2551_v40 = vrot.slane %v3174_v38, %v3663_v18 }
 0x961   : > { %v3176_v45 = vpop.eup %3175  ;;  %v2602_v43 = vmul.f32 %v2544_v1, %v2478_v50  ;;  %v2603_v0 = vmul.f32 %v2551_v40, %v2479_v51 }
 0x962   : > { %v3178_v58 = vpop.eup %3177  ;;  %v2558_v47 = vrot.slane %v3176_v45, %v3660_v23  ;;  %v2565_v44 = vrot.slane %v3176_v45, %v3663_v18 }
 0x963   : > { %v2619_v41 = vmul.f32 %v2896_v37, %v2602_v43  ;;  %v2620_v48 = vmul.f32 %v2617_v46, %v2603_v0  ;;  %v2572_v49 = vrot.slane %v3178_v58, %v3660_v23  ;;  %v2579_v54 = vrot.slane %v3178_v58, %v3663_v18 }
 0x964   : > { %v2604_v55 = vmul.f32 %v2558_v47, %v2480_v63  ;;  %v2605_v56 = vmul.f32 %v2565_v44, %v2481_v2 }
 0x965   : > { %v2636_v57 = vadd.f32 %v2897_v39, %v2619_v41  ;;  %v2637_v52 = vadd.f32 %v2634_v42, %v2620_v48  ;;  %v2606_v59 = vmul.f32 %v2572_v49, %v3775_v8  ;;  %v2607_v50 = vmul.f32 %v2579_v54, %v3777_v3 }
 0x966   : > { %v3180_v51 = vpop.eup %3179  ;;  %v2621_v53 = vmul.f32 %v2896_v37, %v2604_v55  ;;  %v2622_v61 = vmul.f32 %v2617_v46, %v2605_v56 }
 0x967   : > { %2645 = vst.msk [vmem:[%s3889_s18] sm:$0xf] %vm2644_vm7, %v2636_v57  ;;  %2646 = vst.msk [vmem:[%s3889_s18 + $0x4] sm:$0xf] %vm2644_vm7, %v2637_v52  ;;  %v2623_v62 = vmul.f32 %v2896_v37, %v2606_v59  ;;  %v2624_v63 = vmul.f32 %v2617_v46, %v2607_v50  ;;  %v2586_v2 = vrot.slane %v3180_v51, %v3660_v23 }
 0x968   : > { %v2593_v8 = vrot.slane %v3180_v51, %v3663_v18  ;;  %v2638_v3 = vadd.f32 %v2897_v39, %v2621_v53  ;;  %v2639_v9 = vadd.f32 %v2634_v42, %v2622_v61 }
 0x969   : > { %v2640_v4 = vadd.f32 %v2897_v39, %v2623_v62  ;;  %v2641_v60 = vadd.f32 %v2634_v42, %v2624_v63  ;;  %v2608_v5 = vmul.f32 %v2586_v2, %v3786_v12 }
 0x96a   : > { %v2609_v14 = vmul.f32 %v2593_v8, %v3788_v17  ;;  %2647 = vst.msk [vmem:[%s3889_s18 + $0x8] sm:$0xf] %vm2644_vm7, %v2638_v3  ;;  %2648 = vst.msk [vmem:[%s3889_s18 + $0xc] sm:$0xf] %vm2644_vm7, %v2639_v9 }
 0x96b   : > { %2649 = vst.msk [vmem:[%s3889_s18 + $0x10] sm:$0xf] %vm2644_vm7, %v2640_v4  ;;  %2650 = vst.msk [vmem:[%s3889_s18 + $0x14] sm:$0xf] %vm2644_vm7, %v2641_v60  ;;  %v2625_v23 = vmul.f32 %v2896_v37, %v2608_v5 }
 0x96c   : > { %v2626_v18 = vmul.f32 %v2617_v46, %v2609_v14 }
 0x96d   : > { %v2642_v10 = vadd.f32 %v2897_v39, %v2625_v23 }
 0x96e   : > { %v2643_v16 = vadd.f32 %v2634_v42, %v2626_v18 }
 0x96f   : > { %2651 = vst.msk [vmem:[%s3889_s18 + $0x18] sm:$0xf] %vm2644_vm7, %v2642_v10 }
 0x970   : > { %2652 = vst.msk [vmem:[%s3889_s18 + $0x1c] sm:$0xf] %vm2644_vm7, %v2643_v16 }
 0x971 PF: > { %s3896_s19 = sld [smem:[#allocation3_spill]] }
 0x972   : > { %s3897_s25 = sld [smem:[#allocation2_spill]] }
 0x973   : > { %s3898_s26 = sld [smem:[#allocation4_spill]] }
 0x977   : > { %s23_s27 = sadd.s32 1, %s3896_s19  }
 0x978   : > { %p20_p6 = scmp.ge.s32.totalorder %s23_s27, 4  }
 0x97a   :  { %22 = sbr.rel (!%p20_p6) target bundleno = 4 (0x4), region = 142 }

</bundles_post_ra>
